<compile_context>
chip_gen: v7x
topology: tpu7x:2x2x1
jax: 0.10.0
libtpu: 0.0.40
codegen_flags: <defaults>
</compile_context>

<pallas_src>
import math

import jax
import jax.numpy as jnp
from jax import lax
from jax.experimental import pallas as pl
from jax.experimental.pallas import tpu as pltpu


def _round_up(x, m):
    return (x + m - 1) // m * m


def _pick_tile(total, max_tile, mult):
    """Largest multiple of `mult` that divides `total` and is <= max_tile."""
    t = min(total, max_tile)
    t = (t // mult) * mult
    while t >= mult and total % t != 0:
        t -= mult
    return t if t >= mult else total


def _vmem_capacity_bytes():
    try:
        return int(pltpu.get_tpu_info().vmem_capacity_bytes)
    except Exception:
        return 64 * 1024 * 1024   # v7x floor; safe lower bound on every generation


def _vmem_limit_bytes(working_set_bytes):
    """Explicit scoped-VMEM limit: generous over the estimate, clamped below physical."""
    cap = _vmem_capacity_bytes()
    want = 2 * int(working_set_bytes) + 4 * 1024 * 1024
    want = max(want, 32 * 1024 * 1024)          # at least the common scoped default
    return int(min(want, cap - 8 * 1024 * 1024))  # leave headroom below physical VMEM


def _make_recurrence_kernel(seq_len, batch_p, emb_p, hid_p, cdt, t_chunk, unroll):
    """One grid step == one stacked-RNN layer; full-sequence sweep inside."""
    rows_chunk = t_chunk * batch_p
    n_chunks = seq_len // t_chunk

    def kernel(x_ref, h0_ref, wx_ref, wh_ref, b_ref, y_ref, hfin_ref):
        j = pl.program_id(0)
        b = b_ref[...].astype(jnp.float32)            # (1, hid_p)

        def project(src_ref, k_dim):
            # Batched input projection for ALL timesteps of this layer, written
            # straight into y_ref (no dedicated xw scratch).  Chunked so the live
            # f32 temporary stays at rows_chunk x hid_p; row i of the result only
            # depends on row i of the input, so in-place overwrite (src_ref == y_ref
            # for layers > 0) is safe.
            def chunk(c, carry):
                r0 = pl.multiple_of(c * rows_chunk, rows_chunk)
                blk = src_ref[pl.ds(r0, rows_chunk), :].astype(cdt)
                xw = jnp.dot(blk, wx_ref[:k_dim, :],
                             preferred_element_type=jnp.float32) + b
                y_ref[pl.ds(r0, rows_chunk), :] = xw.astype(y_ref.dtype)
                return carry
            lax.fori_loop(0, n_chunks, chunk, 0, unroll=(n_chunks <= 2))

        @pl.when(j == 0)
        def _():
            project(x_ref, emb_p)      # layer 0 reads the (resident) embedded tokens

        @pl.when(j > 0)
        def _():
            project(y_ref, hid_p)      # layer j>0 reads layer j-1's output in place

        # Only the truly sequential part per step: h_t = tanh(xw_t + h_{t-1} @ Wh).
        def step(t, h_prev):
            i0 = pl.multiple_of(t * batch_p, batch_p)
            a = (y_ref[pl.ds(i0, batch_p), :].astype(jnp.float32)
                 + jnp.dot(h_prev.astype(cdt), wh_ref[...],
                           preferred_element_type=jnp.float32))
            h = jnp.tanh(a)
            y_ref[pl.ds(i0, batch_p), :] = h.astype(y_ref.dtype)
            return h

        h_last = lax.fori_loop(0, seq_len, step,
                               h0_ref[...].astype(jnp.float32), unroll=unroll)
        hfin_ref[...] = h_last

    return kernel


def _proj_kernel(y_ref, w_ref, b_ref, o_ref):
    y = y_ref[...].astype(w_ref.dtype)
    o_ref[...] = (jnp.dot(y, w_ref[...], preferred_element_type=jnp.float32)
                  + b_ref[...].astype(jnp.float32)).astype(o_ref.dtype)


def rnn_forward_pallas(tokens, hidden0, emb_weight, layer_params, out_w, out_b,
                       compute_dtype=jnp.bfloat16):
    """tokens: (seq_len, batch) int32; hidden0: (num_layers, batch, hidden).

    layer_params: list of (Wx(in,hid), Wh(hid,hid), b(1,hid)) -- pre-transposed (x @ W).
    out_w: (hidden, vocab); out_b: (1, vocab).
    Returns (logits (seq_len, batch, vocab) f32, hidden (num_layers, batch, hidden) f32).
    """
    seq_len, batch = tokens.shape
    num_layers, _, hidden = hidden0.shape
    emb = emb_weight.shape[1]
    vocab = out_w.shape[1]

    cdt = jnp.dtype(compute_dtype)
    itemsize = cdt.itemsize

    # Lane-dense hidden/emb/vocab; sublane-dense batch (bf16 packs 16 rows per vreg).
    sub = 16 if itemsize < 4 else 8
    batch_p = _round_up(batch, sub)
    emb_p = _round_up(emb, 128)
    hid_p = _round_up(hidden, 128)
    vocab_p = _round_up(vocab, 128)
    in_p = max(emb_p, hid_p)
    tb = seq_len * batch_p

    # Host-side glue: embedding gather + zero-padding (gather has no dense-tile Pallas form).
    x_emb = jnp.take(emb_weight, tokens.reshape(-1), axis=0).reshape(seq_len, batch, emb)
    x_emb = jnp.pad(x_emb, ((0, 0), (0, batch_p - batch), (0, emb_p - emb)))
    x2d = x_emb.reshape(tb, emb_p).astype(cdt)

    h0 = jnp.pad(hidden0, ((0, 0), (0, batch_p - batch), (0, hid_p - hidden))
                 ).astype(jnp.float32)

    # Stack per-layer weights so each layer is one grid step (double-buffered weight DMA).
    wx_l, wh_l, b_l = [], [], []
    for (Wx, Wh, b) in layer_params:
        wx_l.append(jnp.pad(Wx, ((0, in_p - Wx.shape[0]), (0, hid_p - hidden))))
        wh_l.append(jnp.pad(Wh, ((0, hid_p - hidden), (0, hid_p - hidden))))
        b_l.append(jnp.pad(b, ((0, 0), (0, hid_p - hidden))))
    wx_stk = jnp.stack(wx_l).astype(cdt)    # (L, in_p, hid_p)
    wh_stk = jnp.stack(wh_l).astype(cdt)    # (L, hid_p, hid_p)
    b_stk = jnp.stack(b_l).astype(cdt)      # (L, 1, hid_p)

    # Chunking for the all-timestep input projection (bounds the live f32 temporary).
    t_chunk = max(1, min(seq_len, 1024 // batch_p))
    while seq_len % t_chunk != 0:
        t_chunk -= 1
    # Partial unroll of the serial time loop for LLO scheduling visibility.
    if seq_len <= 16:
        unroll = True
    else:
        unroll = next((u for u in (8, 4, 2) if seq_len % u == 0), 1)

    # ---- kernel 1: stacked recurrence, one grid step per layer ----
    rec_flops = (2 * tb * emb_p * hid_p
                 + 2 * max(num_layers - 1, 0) * tb * hid_p * hid_p
                 + 2 * num_layers * seq_len * batch_p * hid_p * hid_p)
    rec_bytes = (tb * emb_p * itemsize + tb * hid_p * itemsize
                 + int(wx_stk.size + wh_stk.size + b_stk.size) * itemsize
                 + 2 * num_layers * batch_p * hid_p * 4)
    rec_cost = pl.CostEstimate(flops=int(rec_flops),
                               transcendentals=int(num_layers * tb * hid_p),
                               bytes_accessed=int(rec_bytes))
    rec_vmem = (tb * emb_p * itemsize                       # resident x (constant index)
                + tb * hid_p * itemsize                      # resident y (accumulator)
                + 2 * (in_p + hid_p + 1) * hid_p * itemsize  # double-buffered layer weights
                + 4 * batch_p * hid_p * 4                    # h0 / hfin blocks
                + 2 * t_chunk * batch_p * hid_p * 4)         # projection chunk temporary

    rec_kernel = _make_recurrence_kernel(seq_len, batch_p, emb_p, hid_p, cdt,
                                         t_chunk, unroll)
    y, hidden_final = pl.pallas_call(
        rec_kernel,
        out_shape=(jax.ShapeDtypeStruct((tb, hid_p), cdt),
                   jax.ShapeDtypeStruct((num_layers, batch_p, hid_p), jnp.float32)),
        grid_spec=pltpu.PrefetchScalarGridSpec(
            num_scalar_prefetch=0,
            grid=(num_layers,),
            in_specs=[
                pl.BlockSpec((tb, emb_p), lambda j: (0, 0)),              # x: resident
                pl.BlockSpec((None, batch_p, hid_p), lambda j: (j, 0, 0)),  # h0[j]
                pl.BlockSpec((None, in_p, hid_p), lambda j: (j, 0, 0)),     # Wx[j]
                pl.BlockSpec((None, hid_p, hid_p), lambda j: (j, 0, 0)),    # Wh[j]
                pl.BlockSpec((None, 1, hid_p), lambda j: (j, 0, 0)),        # b[j]
            ],
            out_specs=[
                pl.BlockSpec((tb, hid_p), lambda j: (0, 0)),              # y: resident
                pl.BlockSpec((None, batch_p, hid_p), lambda j: (j, 0, 0)),  # h_final[j]
            ],
        ),
        compiler_params=pltpu.CompilerParams(
            dimension_semantics=("arbitrary",),          # layers are sequential
            vmem_limit_bytes=_vmem_limit_bytes(rec_vmem)),
        cost_estimate=rec_cost,
    )(x2d, h0, wx_stk, wh_stk, b_stk)

    # ---- kernel 2: vocab projection as a parallel, lane-dense tiled matmul ----
    out_w_p = jnp.pad(out_w, ((0, hid_p - hidden), (0, vocab_p - vocab))).astype(cdt)
    out_b_p = jnp.pad(out_b, ((0, 0), (0, vocab_p - vocab))).astype(cdt)

    cap = _vmem_capacity_bytes()
    max_r = 1024 if cap >= 100 * 1024 * 1024 else 512    # keep tiles smaller on v7x (64 MiB)
    tile_r = _pick_tile(tb, max_r, 8)
    tile_v = _pick_tile(vocab_p, 1024, 128)

    proj_cost = pl.CostEstimate(
        flops=int(2 * tb * hid_p * vocab_p),
        transcendentals=0,
        bytes_accessed=int(tb * hid_p * itemsize
                           + (tb // tile_r) * hid_p * vocab_p * itemsize
                           + vocab_p * itemsize + tb * vocab_p * 4))
    proj_vmem = 2 * (tile_r * hid_p * itemsize + hid_p * tile_v * itemsize
                     + tile_v * itemsize + tile_r * tile_v * 4)

    logits2d = pl.pallas_call(
        _proj_kernel,
        out_shape=jax.ShapeDtypeStruct((tb, vocab_p), jnp.float32),
        grid_spec=pltpu.PrefetchScalarGridSpec(
            num_scalar_prefetch=0,
            grid=(tb // tile_r, vocab_p // tile_v),
            in_specs=[pl.BlockSpec((tile_r, hid_p), lambda i, j: (i, 0)),
                      pl.BlockSpec((hid_p, tile_v), lambda i, j: (0, j)),
                      pl.BlockSpec((1, tile_v), lambda i, j: (0, j))],
            out_specs=pl.BlockSpec((tile_r, tile_v), lambda i, j: (i, j)),
        ),
        compiler_params=pltpu.CompilerParams(
            dimension_semantics=("parallel", "parallel"),
            vmem_limit_bytes=_vmem_limit_bytes(proj_vmem)),
        cost_estimate=proj_cost,
    )(y, out_w_p, out_b_p)

    logits = logits2d.reshape(seq_len, batch_p, vocab_p)
    if batch_p != batch or vocab_p != vocab:       # crop only when padding was added
        logits = logits[:, :batch, :vocab]
    if batch_p != batch or hid_p != hidden:
        hidden_final = hidden_final[:, :batch, :hidden]
    return logits, hidden_final


def rnn_forward_ref(tokens, hidden0, emb_weight, layer_params, out_w, out_b):
    """Pure-JAX reference for correctness checking."""
    seq_len, batch = tokens.shape
    num_layers = hidden0.shape[0]
    logits = []
    hidden = hidden0
    for t in range(seq_len):
        out = emb_weight[tokens[t]]
        new_h = []
        for j in range(num_layers):
            Wx, Wh, b = layer_params[j]
            h = jnp.tanh(out @ Wx + hidden[j] @ Wh + b)
            new_h.append(h)
            out = h
        hidden = jnp.stack(new_h)
        logits.append(out @ out_w + out_b)
    return jnp.stack(logits), hidden


if __name__ == "__main__":
    # Small shapes consistent with the module's constructor.
    emb_size = 32
    hidden_size = 32
    seq_len = 8
    batch_size = 2
    vocab_size = 64
    num_layers = 2

    key = jax.random.PRNGKey(0)
    k_tok, k_emb, k_out, *k_layers = jax.random.split(key, 3 + num_layers)

    # Deterministic parameter init (mirrors the PyTorch init ranges).
    dl = 1.0 / math.sqrt(hidden_size)
    emb_weight = jax.random.uniform(k_emb, (vocab_size, emb_size), jnp.float32, -0.1, 0.1)

    layer_params = []
    for j in range(num_layers):
        in_feat = emb_size if j == 0 else hidden_size
        kx, kh, kb = jax.random.split(k_layers[j], 3)
        # stored already transposed: (in_features, out_features)
        Wx = jax.random.uniform(kx, (in_feat, hidden_size), jnp.float32, -dl, dl)
        Wh = jax.random.uniform(kh, (hidden_size, hidden_size), jnp.float32, -dl, dl)
        b = jax.random.uniform(kb, (1, hidden_size), jnp.float32, -dl, dl)
        layer_params.append((Wx, Wh, b))

    out_w = jax.random.uniform(k_out, (hidden_size, vocab_size), jnp.float32, -0.1, 0.1)
    out_b = jnp.zeros((1, vocab_size), jnp.float32)

    tokens = jax.random.randint(k_tok, (seq_len, batch_size), 0, vocab_size, jnp.int32)
    hidden0 = jnp.zeros((num_layers, batch_size, hidden_size), jnp.float32)

    logits_ref, hidden_ref = rnn_forward_ref(
        tokens, hidden0, emb_weight, layer_params, out_w, out_b)

    # f32 path: tight correctness check against the pure-JAX reference.
    logits, hidden_final = rnn_forward_pallas(
        tokens, hidden0, emb_weight, layer_params, out_w, out_b,
        compute_dtype=jnp.float32)
    logits = jax.block_until_ready(logits)
    hidden_final = jax.block_until_ready(hidden_final)

    assert logits.shape == (seq_len, batch_size, vocab_size)
    assert hidden_final.shape == (num_layers, batch_size, hidden_size)
    assert jnp.allclose(logits, logits_ref, atol=1e-4, rtol=1e-4)
    assert jnp.allclose(hidden_final, hidden_ref, atol=1e-4, rtol=1e-4)

    # bf16 production default (f32 accumulation): looser tolerance.
    logits_bf, hidden_bf = rnn_forward_pallas(
        tokens, hidden0, emb_weight, layer_params, out_w, out_b)
    logits_bf = jax.block_until_ready(logits_bf)
    hidden_bf = jax.block_until_ready(hidden_bf)
    assert logits_bf.shape == (seq_len, batch_size, vocab_size)
    assert jnp.allclose(logits_bf, logits_ref, atol=5e-2, rtol=5e-2)
    assert jnp.allclose(hidden_bf, hidden_ref, atol=5e-2, rtol=5e-2)

    print("KERNEL_OK")
</pallas_src>

<mosaic_0001>
module attributes {stable_mosaic.version = 11 : i64} {
  func.func @kernel(%arg0: i32, %arg1: memref<64x128xf32, #tpu.memory_space<vmem>>, %arg2: memref<1x8x128xf32, #tpu.memory_space<vmem>>, %arg3: memref<1x128x128xf32, #tpu.memory_space<vmem>>, %arg4: memref<1x128x128xf32, #tpu.memory_space<vmem>>, %arg5: memref<1x1x128xf32, #tpu.memory_space<vmem>>, %arg6: memref<64x128xf32, #tpu.memory_space<vmem>>, %arg7: memref<1x8x128xf32, #tpu.memory_space<vmem>>) attributes {dimension_semantics = [#tpu.dimension_semantics<arbitrary>], iteration_bounds = array<i64: 2>, scalar_prefetch = 0 : i64, scratch_operands = 0 : i64, tpu.core_type = #tpu.core_type<tc>, window_params = [{pipeline_mode = #tpu.pipeline_mode<synchronous>, transform_indices = @transform_0, window_bounds = array<i64: 64, 128>}, {transform_indices = @transform_1, window_bounds = array<i64: 1, 8, 128>}, {transform_indices = @transform_2, window_bounds = array<i64: 1, 128, 128>}, {transform_indices = @transform_3, window_bounds = array<i64: 1, 128, 128>}, {transform_indices = @transform_4, window_bounds = array<i64: 1, 1, 128>}, {pipeline_mode = #tpu.pipeline_mode<synchronous>, transform_indices = @transform_5, window_bounds = array<i64: 64, 128>}, {transform_indices = @transform_6, window_bounds = array<i64: 1, 8, 128>}]} {
    %c0 = arith.constant 0 : index
    %c0_0 = arith.constant 0 : index
    %c0_1 = arith.constant 0 : index
    %0 = vector.load %arg5[%c0, %c0_0, %c0_1] : memref<1x1x128xf32, #tpu.memory_space<vmem>>, vector<1x1x128xf32>
    %1 = vector.shape_cast %0 : vector<1x1x128xf32> to vector<1x128xf32>
    %c0_i32 = arith.constant 0 : i32
    %2 = arith.cmpi eq, %arg0, %c0_i32 : i32
    %3 = arith.extui %2 : i1 to i32
    %c0_i32_2 = arith.constant 0 : i32
    %4 = arith.cmpi ne, %3, %c0_i32_2 : i32
    scf.if %4 {
      %c0_i32_67 = arith.constant 0 : i32
      %c64_i32 = arith.constant 64 : i32
      %101 = arith.muli %c0_i32_67, %c64_i32 : i32
      %102 = tpu.assume_multiple %101, 64 : i32
      %103 = arith.index_cast %102 : i32 to index
      %c0_68 = arith.constant 0 : index
      %104 = vector.load %arg1[%103, %c0_68] : memref<64x128xf32, #tpu.memory_space<vmem>>, vector<64x128xf32>
      %c0_69 = arith.constant 0 : index
      %c0_70 = arith.constant 0 : index
      %c0_71 = arith.constant 0 : index
      %105 = vector.load %arg3[%c0_69, %c0_70, %c0_71] : memref<1x128x128xf32, #tpu.memory_space<vmem>>, vector<1x128x128xf32>
      %106 = vector.shape_cast %105 : vector<1x128x128xf32> to vector<128x128xf32>
      %cst_72 = arith.constant dense<0.000000e+00> : vector<64x128xf32>
      %107 = tpu.matmul %104, %106, %cst_72 {dimension_numbers = #tpu.dot_dimension_numbers<[1], [0], [0], [1], [0, 0, 1, 1], [], []>} : vector<64x128xf32>, vector<128x128xf32>, vector<64x128xf32> -> vector<64x128xf32>
      %108 = vector.broadcast %1 : vector<1x128xf32> to vector<64x128xf32>
      %109 = arith.addf %107, %108 : vector<64x128xf32>
      %110 = arith.index_cast %102 : i32 to index
      %c0_73 = arith.constant 0 : index
      %111 = vector.load %arg6[%110, %c0_73] : memref<64x128xf32, #tpu.memory_space<vmem>>, vector<64x128xf32>
      tpu.vector_store %arg6[%110, %c0_73], %109 {strides = array<i32>} : memref<64x128xf32, #tpu.memory_space<vmem>>, vector<64x128xf32>,
      %c1_i32_74 = arith.constant 1 : i32
    } else {
    }
    %c0_i32_3 = arith.constant 0 : i32
    %5 = arith.cmpi sgt, %arg0, %c0_i32_3 : i32
    %6 = arith.extui %5 : i1 to i32
    %c0_i32_4 = arith.constant 0 : i32
    %7 = arith.cmpi ne, %6, %c0_i32_4 : i32
    scf.if %7 {
      %c0_i32_67 = arith.constant 0 : i32
      %c64_i32 = arith.constant 64 : i32
      %101 = arith.muli %c0_i32_67, %c64_i32 : i32
      %102 = tpu.assume_multiple %101, 64 : i32
      %103 = arith.index_cast %102 : i32 to index
      %c0_68 = arith.constant 0 : index
      %104 = vector.load %arg6[%103, %c0_68] : memref<64x128xf32, #tpu.memory_space<vmem>>, vector<64x128xf32>
      %c0_69 = arith.constant 0 : index
      %c0_70 = arith.constant 0 : index
      %c0_71 = arith.constant 0 : index
      %105 = vector.load %arg3[%c0_69, %c0_70, %c0_71] : memref<1x128x128xf32, #tpu.memory_space<vmem>>, vector<1x128x128xf32>
      %106 = vector.shape_cast %105 : vector<1x128x128xf32> to vector<128x128xf32>
      %cst_72 = arith.constant dense<0.000000e+00> : vector<64x128xf32>
      %107 = tpu.matmul %104, %106, %cst_72 {dimension_numbers = #tpu.dot_dimension_numbers<[1], [0], [0], [1], [0, 0, 1, 1], [], []>} : vector<64x128xf32>, vector<128x128xf32>, vector<64x128xf32> -> vector<64x128xf32>
      %108 = vector.broadcast %1 : vector<1x128xf32> to vector<64x128xf32>
      %109 = arith.addf %107, %108 : vector<64x128xf32>
      %110 = arith.index_cast %102 : i32 to index
      %c0_73 = arith.constant 0 : index
      %111 = vector.load %arg6[%110, %c0_73] : memref<64x128xf32, #tpu.memory_space<vmem>>, vector<64x128xf32>
      tpu.vector_store %arg6[%110, %c0_73], %109 {strides = array<i32>} : memref<64x128xf32, #tpu.memory_space<vmem>>, vector<64x128xf32>,
      %c1_i32_74 = arith.constant 1 : i32
    } else {
    }
    %c0_5 = arith.constant 0 : index
    %c0_6 = arith.constant 0 : index
    %c0_7 = arith.constant 0 : index
    %8 = vector.load %arg2[%c0_5, %c0_6, %c0_7] : memref<1x8x128xf32, #tpu.memory_space<vmem>>, vector<1x8x128xf32>
    %9 = vector.shape_cast %8 : vector<1x8x128xf32> to vector<8x128xf32>
    %c0_i32_8 = arith.constant 0 : i32
    %c8_i32 = arith.constant 8 : i32
    %10 = arith.muli %c0_i32_8, %c8_i32 : i32
    %11 = tpu.assume_multiple %10, 8 : i32
    %12 = arith.index_cast %11 : i32 to index
    %c0_9 = arith.constant 0 : index
    %13 = vector.load %arg6[%12, %c0_9] : memref<64x128xf32, #tpu.memory_space<vmem>>, vector<8x128xf32>
    %c0_10 = arith.constant 0 : index
    %c0_11 = arith.constant 0 : index
    %c0_12 = arith.constant 0 : index
    %14 = vector.load %arg4[%c0_10, %c0_11, %c0_12] : memref<1x128x128xf32, #tpu.memory_space<vmem>>, vector<1x128x128xf32>
    %15 = vector.shape_cast %14 : vector<1x128x128xf32> to vector<128x128xf32>
    %cst = arith.constant dense<0.000000e+00> : vector<8x128xf32>
    %16 = tpu.matmul %9, %15, %cst {dimension_numbers = #tpu.dot_dimension_numbers<[1], [0], [0], [1], [0, 0, 1, 1], [], []>} : vector<8x128xf32>, vector<128x128xf32>, vector<8x128xf32> -> vector<8x128xf32>
    %17 = arith.addf %13, %16 : vector<8x128xf32>
    %18 = math.tanh %17 : vector<8x128xf32>
    %19 = arith.index_cast %11 : i32 to index
    %c0_13 = arith.constant 0 : index
    %20 = vector.load %arg6[%19, %c0_13] : memref<64x128xf32, #tpu.memory_space<vmem>>, vector<8x128xf32>
    tpu.vector_store %arg6[%19, %c0_13], %18 {strides = array<i32>} : memref<64x128xf32, #tpu.memory_space<vmem>>, vector<8x128xf32>,
    %c1_i32 = arith.constant 1 : i32
    %c8_i32_14 = arith.constant 8 : i32
    %21 = arith.muli %c1_i32, %c8_i32_14 : i32
    %22 = tpu.assume_multiple %21, 8 : i32
    %23 = arith.index_cast %22 : i32 to index
    %c0_15 = arith.constant 0 : index
    %24 = vector.load %arg6[%23, %c0_15] : memref<64x128xf32, #tpu.memory_space<vmem>>, vector<8x128xf32>
    %c0_16 = arith.constant 0 : index
    %c0_17 = arith.constant 0 : index
    %c0_18 = arith.constant 0 : index
    %25 = vector.load %arg4[%c0_16, %c0_17, %c0_18] : memref<1x128x128xf32, #tpu.memory_space<vmem>>, vector<1x128x128xf32>
    %26 = vector.shape_cast %25 : vector<1x128x128xf32> to vector<128x128xf32>
    %cst_19 = arith.constant dense<0.000000e+00> : vector<8x128xf32>
    %27 = tpu.matmul %18, %26, %cst_19 {dimension_numbers = #tpu.dot_dimension_numbers<[1], [0], [0], [1], [0, 0, 1, 1], [], []>} : vector<8x128xf32>, vector<128x128xf32>, vector<8x128xf32> -> vector<8x128xf32>
    %28 = arith.addf %24, %27 : vector<8x128xf32>
    %29 = math.tanh %28 : vector<8x128xf32>
    %30 = arith.index_cast %22 : i32 to index
    %c0_20 = arith.constant 0 : index
    %31 = vector.load %arg6[%30, %c0_20] : memref<64x128xf32, #tpu.memory_space<vmem>>, vector<8x128xf32>
    tpu.vector_store %arg6[%30, %c0_20], %29 {strides = array<i32>} : memref<64x128xf32, #tpu.memory_space<vmem>>, vector<8x128xf32>,
    %c2_i32 = arith.constant 2 : i32
    %c8_i32_21 = arith.constant 8 : i32
    %32 = arith.muli %c2_i32, %c8_i32_21 : i32
    %33 = tpu.assume_multiple %32, 8 : i32
    %34 = arith.index_cast %33 : i32 to index
    %c0_22 = arith.constant 0 : index
    %35 = vector.load %arg6[%34, %c0_22] : memref<64x128xf32, #tpu.memory_space<vmem>>, vector<8x128xf32>
    %c0_23 = arith.constant 0 : index
    %c0_24 = arith.constant 0 : index
    %c0_25 = arith.constant 0 : index
    %36 = vector.load %arg4[%c0_23, %c0_24, %c0_25] : memref<1x128x128xf32, #tpu.memory_space<vmem>>, vector<1x128x128xf32>
    %37 = vector.shape_cast %36 : vector<1x128x128xf32> to vector<128x128xf32>
    %cst_26 = arith.constant dense<0.000000e+00> : vector<8x128xf32>
    %38 = tpu.matmul %29, %37, %cst_26 {dimension_numbers = #tpu.dot_dimension_numbers<[1], [0], [0], [1], [0, 0, 1, 1], [], []>} : vector<8x128xf32>, vector<128x128xf32>, vector<8x128xf32> -> vector<8x128xf32>
    %39 = arith.addf %35, %38 : vector<8x128xf32>
    %40 = math.tanh %39 : vector<8x128xf32>
    %41 = arith.index_cast %33 : i32 to index
    %c0_27 = arith.constant 0 : index
    %42 = vector.load %arg6[%41, %c0_27] : memref<64x128xf32, #tpu.memory_space<vmem>>, vector<8x128xf32>
    tpu.vector_store %arg6[%41, %c0_27], %40 {strides = array<i32>} : memref<64x128xf32, #tpu.memory_space<vmem>>, vector<8x128xf32>,
    %c3_i32 = arith.constant 3 : i32
    %c8_i32_28 = arith.constant 8 : i32
    %43 = arith.muli %c3_i32, %c8_i32_28 : i32
    %44 = tpu.assume_multiple %43, 8 : i32
    %45 = arith.index_cast %44 : i32 to index
    %c0_29 = arith.constant 0 : index
    %46 = vector.load %arg6[%45, %c0_29] : memref<64x128xf32, #tpu.memory_space<vmem>>, vector<8x128xf32>
    %c0_30 = arith.constant 0 : index
    %c0_31 = arith.constant 0 : index
    %c0_32 = arith.constant 0 : index
    %47 = vector.load %arg4[%c0_30, %c0_31, %c0_32] : memref<1x128x128xf32, #tpu.memory_space<vmem>>, vector<1x128x128xf32>
    %48 = vector.shape_cast %47 : vector<1x128x128xf32> to vector<128x128xf32>
    %cst_33 = arith.constant dense<0.000000e+00> : vector<8x128xf32>
    %49 = tpu.matmul %40, %48, %cst_33 {dimension_numbers = #tpu.dot_dimension_numbers<[1], [0], [0], [1], [0, 0, 1, 1], [], []>} : vector<8x128xf32>, vector<128x128xf32>, vector<8x128xf32> -> vector<8x128xf32>
    %50 = arith.addf %46, %49 : vector<8x128xf32>
    %51 = math.tanh %50 : vector<8x128xf32>
    %52 = arith.index_cast %44 : i32 to index
    %c0_34 = arith.constant 0 : index
    %53 = vector.load %arg6[%52, %c0_34] : memref<64x128xf32, #tpu.memory_space<vmem>>, vector<8x128xf32>
    tpu.vector_store %arg6[%52, %c0_34], %51 {strides = array<i32>} : memref<64x128xf32, #tpu.memory_space<vmem>>, vector<8x128xf32>,
    %c4_i32 = arith.constant 4 : i32
    %c8_i32_35 = arith.constant 8 : i32
    %54 = arith.muli %c4_i32, %c8_i32_35 : i32
    %55 = tpu.assume_multiple %54, 8 : i32
    %56 = arith.index_cast %55 : i32 to index
    %c0_36 = arith.constant 0 : index
    %57 = vector.load %arg6[%56, %c0_36] : memref<64x128xf32, #tpu.memory_space<vmem>>, vector<8x128xf32>
    %c0_37 = arith.constant 0 : index
    %c0_38 = arith.constant 0 : index
    %c0_39 = arith.constant 0 : index
    %58 = vector.load %arg4[%c0_37, %c0_38, %c0_39] : memref<1x128x128xf32, #tpu.memory_space<vmem>>, vector<1x128x128xf32>
    %59 = vector.shape_cast %58 : vector<1x128x128xf32> to vector<128x128xf32>
    %cst_40 = arith.constant dense<0.000000e+00> : vector<8x128xf32>
    %60 = tpu.matmul %51, %59, %cst_40 {dimension_numbers = #tpu.dot_dimension_numbers<[1], [0], [0], [1], [0, 0, 1, 1], [], []>} : vector<8x128xf32>, vector<128x128xf32>, vector<8x128xf32> -> vector<8x128xf32>
    %61 = arith.addf %57, %60 : vector<8x128xf32>
    %62 = math.tanh %61 : vector<8x128xf32>
    %63 = arith.index_cast %55 : i32 to index
    %c0_41 = arith.constant 0 : index
    %64 = vector.load %arg6[%63, %c0_41] : memref<64x128xf32, #tpu.memory_space<vmem>>, vector<8x128xf32>
    tpu.vector_store %arg6[%63, %c0_41], %62 {strides = array<i32>} : memref<64x128xf32, #tpu.memory_space<vmem>>, vector<8x128xf32>,
    %c5_i32 = arith.constant 5 : i32
    %c8_i32_42 = arith.constant 8 : i32
    %65 = arith.muli %c5_i32, %c8_i32_42 : i32
    %66 = tpu.assume_multiple %65, 8 : i32
    %67 = arith.index_cast %66 : i32 to index
    %c0_43 = arith.constant 0 : index
    %68 = vector.load %arg6[%67, %c0_43] : memref<64x128xf32, #tpu.memory_space<vmem>>, vector<8x128xf32>
    %c0_44 = arith.constant 0 : index
    %c0_45 = arith.constant 0 : index
    %c0_46 = arith.constant 0 : index
    %69 = vector.load %arg4[%c0_44, %c0_45, %c0_46] : memref<1x128x128xf32, #tpu.memory_space<vmem>>, vector<1x128x128xf32>
    %70 = vector.shape_cast %69 : vector<1x128x128xf32> to vector<128x128xf32>
    %cst_47 = arith.constant dense<0.000000e+00> : vector<8x128xf32>
    %71 = tpu.matmul %62, %70, %cst_47 {dimension_numbers = #tpu.dot_dimension_numbers<[1], [0], [0], [1], [0, 0, 1, 1], [], []>} : vector<8x128xf32>, vector<128x128xf32>, vector<8x128xf32> -> vector<8x128xf32>
    %72 = arith.addf %68, %71 : vector<8x128xf32>
    %73 = math.tanh %72 : vector<8x128xf32>
    %74 = arith.index_cast %66 : i32 to index
    %c0_48 = arith.constant 0 : index
    %75 = vector.load %arg6[%74, %c0_48] : memref<64x128xf32, #tpu.memory_space<vmem>>, vector<8x128xf32>
    tpu.vector_store %arg6[%74, %c0_48], %73 {strides = array<i32>} : memref<64x128xf32, #tpu.memory_space<vmem>>, vector<8x128xf32>,
    %c6_i32 = arith.constant 6 : i32
    %c8_i32_49 = arith.constant 8 : i32
    %76 = arith.muli %c6_i32, %c8_i32_49 : i32
    %77 = tpu.assume_multiple %76, 8 : i32
    %78 = arith.index_cast %77 : i32 to index
    %c0_50 = arith.constant 0 : index
    %79 = vector.load %arg6[%78, %c0_50] : memref<64x128xf32, #tpu.memory_space<vmem>>, vector<8x128xf32>
    %c0_51 = arith.constant 0 : index
    %c0_52 = arith.constant 0 : index
    %c0_53 = arith.constant 0 : index
    %80 = vector.load %arg4[%c0_51, %c0_52, %c0_53] : memref<1x128x128xf32, #tpu.memory_space<vmem>>, vector<1x128x128xf32>
    %81 = vector.shape_cast %80 : vector<1x128x128xf32> to vector<128x128xf32>
    %cst_54 = arith.constant dense<0.000000e+00> : vector<8x128xf32>
    %82 = tpu.matmul %73, %81, %cst_54 {dimension_numbers = #tpu.dot_dimension_numbers<[1], [0], [0], [1], [0, 0, 1, 1], [], []>} : vector<8x128xf32>, vector<128x128xf32>, vector<8x128xf32> -> vector<8x128xf32>
    %83 = arith.addf %79, %82 : vector<8x128xf32>
    %84 = math.tanh %83 : vector<8x128xf32>
    %85 = arith.index_cast %77 : i32 to index
    %c0_55 = arith.constant 0 : index
    %86 = vector.load %arg6[%85, %c0_55] : memref<64x128xf32, #tpu.memory_space<vmem>>, vector<8x128xf32>
    tpu.vector_store %arg6[%85, %c0_55], %84 {strides = array<i32>} : memref<64x128xf32, #tpu.memory_space<vmem>>, vector<8x128xf32>,
    %c7_i32 = arith.constant 7 : i32
    %c8_i32_56 = arith.constant 8 : i32
    %87 = arith.muli %c7_i32, %c8_i32_56 : i32
    %88 = tpu.assume_multiple %87, 8 : i32
    %89 = arith.index_cast %88 : i32 to index
    %c0_57 = arith.constant 0 : index
    %90 = vector.load %arg6[%89, %c0_57] : memref<64x128xf32, #tpu.memory_space<vmem>>, vector<8x128xf32>
    %c0_58 = arith.constant 0 : index
    %c0_59 = arith.constant 0 : index
    %c0_60 = arith.constant 0 : index
    %91 = vector.load %arg4[%c0_58, %c0_59, %c0_60] : memref<1x128x128xf32, #tpu.memory_space<vmem>>, vector<1x128x128xf32>
    %92 = vector.shape_cast %91 : vector<1x128x128xf32> to vector<128x128xf32>
    %cst_61 = arith.constant dense<0.000000e+00> : vector<8x128xf32>
    %93 = tpu.matmul %84, %92, %cst_61 {dimension_numbers = #tpu.dot_dimension_numbers<[1], [0], [0], [1], [0, 0, 1, 1], [], []>} : vector<8x128xf32>, vector<128x128xf32>, vector<8x128xf32> -> vector<8x128xf32>
    %94 = arith.addf %90, %93 : vector<8x128xf32>
    %95 = math.tanh %94 : vector<8x128xf32>
    %96 = arith.index_cast %88 : i32 to index
    %c0_62 = arith.constant 0 : index
    %97 = vector.load %arg6[%96, %c0_62] : memref<64x128xf32, #tpu.memory_space<vmem>>, vector<8x128xf32>
    tpu.vector_store %arg6[%96, %c0_62], %95 {strides = array<i32>} : memref<64x128xf32, #tpu.memory_space<vmem>>, vector<8x128xf32>,
    %c8_i32_63 = arith.constant 8 : i32
    %c0_64 = arith.constant 0 : index
    %c0_65 = arith.constant 0 : index
    %c0_66 = arith.constant 0 : index
    %98 = vector.load %arg7[%c0_64, %c0_65, %c0_66] : memref<1x8x128xf32, #tpu.memory_space<vmem>>, vector<1x8x128xf32>
    %99 = vector.shape_cast %98 : vector<1x8x128xf32> to vector<8x128xf32>
    %100 = vector.shape_cast %95 : vector<8x128xf32> to vector<1x8x128xf32>
    tpu.vector_store %arg7[%c0_64, %c0_65, %c0_66], %100 {strides = array<i32>} : memref<1x8x128xf32, #tpu.memory_space<vmem>>, vector<1x8x128xf32>,
    return
  }
  func.func @transform_0(%arg0: i32) -> (i32, i32) {
    %c0_i32 = arith.constant 0 : i32
    %c0_i32_0 = arith.constant 0 : i32
    %c0_i32_1 = arith.constant 0 : i32
    return %c0_i32, %c0_i32_0 : i32, i32
  }
  func.func @transform_1(%arg0: i32) -> (i32, i32, i32) {
    %c0_i32 = arith.constant 0 : i32
    %c0_i32_0 = arith.constant 0 : i32
    %c0_i32_1 = arith.constant 0 : i32
    return %arg0, %c0_i32, %c0_i32_0 : i32, i32, i32
  }
  func.func @transform_2(%arg0: i32) -> (i32, i32, i32) {
    %c0_i32 = arith.constant 0 : i32
    %c0_i32_0 = arith.constant 0 : i32
    %c0_i32_1 = arith.constant 0 : i32
    return %arg0, %c0_i32, %c0_i32_0 : i32, i32, i32
  }
  func.func @transform_3(%arg0: i32) -> (i32, i32, i32) {
    %c0_i32 = arith.constant 0 : i32
    %c0_i32_0 = arith.constant 0 : i32
    %c0_i32_1 = arith.constant 0 : i32
    return %arg0, %c0_i32, %c0_i32_0 : i32, i32, i32
  }
  func.func @transform_4(%arg0: i32) -> (i32, i32, i32) {
    %c0_i32 = arith.constant 0 : i32
    %c0_i32_0 = arith.constant 0 : i32
    %c0_i32_1 = arith.constant 0 : i32
    return %arg0, %c0_i32, %c0_i32_0 : i32, i32, i32
  }
  func.func @transform_5(%arg0: i32) -> (i32, i32) {
    %c0_i32 = arith.constant 0 : i32
    %c0_i32_0 = arith.constant 0 : i32
    %c0_i32_1 = arith.constant 0 : i32
    return %c0_i32, %c0_i32_0 : i32, i32
  }
  func.func @transform_6(%arg0: i32) -> (i32, i32, i32) {
    %c0_i32 = arith.constant 0 : i32
    %c0_i32_0 = arith.constant 0 : i32
    %c0_i32_1 = arith.constant 0 : i32
    return %arg0, %c0_i32, %c0_i32_0 : i32, i32, i32
  }
}

</mosaic_0001>

<bundles_post_ra>
// kernel: tpu_custom_call.1
= control target key start
LH: loop header
LB: loop body
LE: loop exit
PB: predicated region body
PF: predicated region fallthrough
CT: control target
= control target key end

     0   :  { %s3357_s0 = inlined_call_operand.hbm [shape: f32[64,128], index: 0, kind: input, shape index: {}]   ;;  %s3358_s1 = inlined_call_operand.hbm [shape: f32[2,8,128], index: 1, kind: input, shape index: {}]   ;;  %s3359_s2 = inlined_call_operand.hbm [shape: f32[2,128,128], index: 2, kind: input, shape index: {}]   ;;  %s3360_s3 = inlined_call_operand.hbm [shape: f32[2,128,128], index: 3, kind: input, shape index: {}]   ;;  %s3361_s4 = inlined_call_operand.vmem [shape: f32[2,1,128], index: 4, kind: input, shape index: {}]   ;;  %s3362_s5 = inlined_call_operand.hbm [shape: f32[64,128], index: 5, kind: output, shape index: {0}]   ;;  %s3363_s6 = inlined_call_operand.hbm [shape: f32[2,8,128], index: 6, kind: output, shape index: {1}]  }
   0x1   :  { %3381 = sst [smem:[#allocation23_spill]] %s3358_s1 }
   0x2   :  { %3382 = sst [smem:[#allocation24_spill]] %s3359_s2 }
   0x3   :  { %12 = vsyncpa [#allocation3], 0 }
   0x4   :  { %13 = vsyncpa [#allocation6], 0 }
   0x5   :  { %15 = vsyncpa [#allocation6 + $0x1], 0 }
   0x6   :  { %16 = vsyncpa [#allocation9], 0 }
   0x7   :  { %18 = vsyncpa [#allocation9 + $0x1], 0 }
   0x8   :  { %19 = vsyncpa [#allocation4], 0 }
   0x9   :  { %20 = vsyncpa [#allocation12], 0 }
   0xa   :  { %22 = vsyncpa [#allocation12 + $0x1], 0  ;;  %s2807_s21 = smov 0   ;;  %s2809_s22 = smov 0  }
   0xb   :  { %s2811_s23 = smov 0   ;;  %s2813_s24 = smov 0  }
   0xc LB: > { %3383 = sst [smem:[#allocation18_spill]] %s2745_s21  ;;  %s2828_s25 = sadd.s32 1, %s2757_s24   ;;  %s2757_s24 = sphi %s2813_s24, %s3418_s24   ;;  %s2753_s23 = sphi %s2811_s23, %s3420_s23   ;;  %s2749_s22 = sphi %s2809_s22, %s3422_s22   ;;  %s2745_s21 = sphi %s2807_s21, %s3421_s21  }
   0xd   : > { %3384 = sst [smem:[#allocation19_spill]] %s2753_s23  ;;  %s56_s26 = sadd.s32 1, %s2753_s23 }
   0xe   : > { %3385 = sst [smem:[#allocation20_spill]] %s2828_s25  ;;  %s53_s27 = ssub.s32 %s2757_s24, %s2828_s25 }
   0xf   : > { %p3364_p0 = scmp.ne.s32.totalorder %s2753_s23, %s2749_s22  ;;  %p54_p1 = scmp.eq.s32.totalorder %s53_s27, 0 }
  0x10   : > { %p64_p2 = scmp.eq.s32.totalorder %s2757_s24, 0  ;;  %p2473_p4 = scmp.lt.s32.totalorder %s2757_s24, 2 }
  0x11   : > { %s2839_s28 = scalar_select %p54_p1, %s2753_s23, %s56_s26  }
  0x12   : > { %p65_p5 = por %p64_p2, %p3364_p0  ;;  %s231_s29 = sand.u32 1, %s2757_s24  }
  0x13   : > { %3386 = sst [smem:[#allocation21_spill]] %s2839_s28  ;;  %s2846_s30 = sand.u32 1, %s2753_s23  }
  0x14   : > { %s1574_s7 = sshll.u32 %s2846_s30, 3  ;;  %s1575_s8 = sshll.u32 %s2757_s24, 7 }
  0x15   : > { %s3387_s1 = sld [smem:[#allocation23_spill]]  ;;  %s235_s12 = scalar_lea.vmem [#allocation5], %s1574_s7 }
  0x16   : > { %s242_s13 = sshll.u32 %s235_s12, 4  ;;  %p2855_p6 = pnand %p2473_p4, %p65_p5  ;;  %s2859_s13 = int_to_ptr.vmem [resolvable:$true] %s242_s13 }
  0x17   : > { %s3365_s15 = sshll.u32 %s2846_s30, 7  ;;  %s2862_s16 = scalar_lea.sflag [#allocation6], %s231_s29 }
  0x18   : > { %s3388_s14 = scalar_select %p2855_p6, 1, 0 }
  0x19   : > { %p2868_p8 = pneg %p2855_p6 }
  0x1b   : > { %s2853_s11 = scalar_lea.hbm %s3387_s1, %s1575_s8  ;;  %s2540_s26 = scalar_lea.hbm %s3387_s1, 256 }
  0x1c   : > { %s2535_s17 = scalar_lea.hbm %s2853_s11, 128  ;;  %p2541_p11 = scmp.lt.u32.totalorder %s2853_s11, %s3387_s1 }
  0x1d   : > { %p2536_p7 = scmp.ne.s32.totalorder %s2853_s11, %s2535_s17  ;;  %p2542_p12 = scmp.lt.u32.totalorder %s2540_s26, %s2535_s17 }
  0x1e   : > { %s3389_s18 = scalar_select %p2868_p8, 1, 0 }
  0x1f   : > { %p2538_p9 = pnand %p2868_p8, %p2536_p7  ;;  %p2543_p13 = por %p2542_p12, %p2541_p11 }
  0x20   : > { %p2544_p1 = scmp.lt.u32.totalorder %s2535_s17, %s2853_s11 }
  0x21   : > { %p2539_p10 = pneg %p2538_p9 }
  0x22   : > { %p2545_p2 = por %p2544_p1, %p2543_p13 }
  0x24   : > { %p2546_p4 = pnand %p2545_p2, %p2539_p10 }
  0x26   : > { %2549 = shalt.err (!%p2546_p4)
}
  0x27   : > { %s2550_s29 = scalar_lea.vmem %s2859_s13, 128  ;;  %s2759_s8 = smov [#allocation5]  }
  0x28   : > { %p2551_p5 = scmp.ne.s32.totalorder %s2859_s13, %s2550_s29  ;;  %s2555_s9 = sshll.u32 %s2759_s8, 4  ;;  %s2556_s9 = int_to_ptr.vmem [resolvable:$false] %s2555_s9 }
  0x29   : > { %s2557_s10 = scalar_lea.vmem %s2556_s9, 256  ;;  %p2558_p3 = scmp.lt.s32.totalorder %s2859_s13, %s2556_s9 }
  0x2a   : > { %p2553_p7 = pnand %p2551_p5, %p2868_p8  ;;  %p2559_p0 = scmp.lt.s32.totalorder %s2557_s10, %s2550_s29 }
  0x2c   : > { %p2554_p9 = pneg %p2553_p7  ;;  %p2560_p11 = por %p2559_p0, %p2558_p3 }
  0x2e   : > { %p2561_p12 = pnand %p2560_p11, %p2554_p9 }
  0x30   : > { %2564 = shalt.err (!%p2561_p12)
}
  0x31   : > { %2461 = dma.hbm_to_vmem [thread:$0]  (!%p2855_p6), %s2853_s11, 128, %s2859_s13, %s2862_s16  }
  0x32   : > { %s253_s12 = scalar_lea.vmem [#allocation7], %s3365_s15  ;;  %s2897_s19 = sadd.s32 4294967295, %s2757_s24  }
  0x33   : > { %s260_s17 = sshll.u32 %s253_s12, 4  ;;  %s1570_s20 = sadd.s32 4294967294, %s2757_s24   ;;  %s2894_s17 = int_to_ptr.vmem [resolvable:$true] %s260_s17 }
  0x34   : > { %p69_p0 = scmp.ne.s32.totalorder %s2749_s22, %s2745_s21  ;;  %p3369_p3 = scmp.eq.s32.totalorder %s2897_s19, 0 }
  0x35   : > { %p3367_p10 = scmp.eq.s32.totalorder %s2897_s19, 1  ;;  %p198_p13 = scmp.eq.s32.totalorder %s1570_s20, 1 }
  0x36   : > { %p2906_p1 = por %p3369_p3, %p69_p0  ;;  %p1571_p2 = scmp.ge.s32.totalorder %s2757_s24, 1 }
  0x37   : > { %p3391_p4 = scmp.ne.s32.totalorder %s2753_s23, %s2749_s22  ;;  %p2920_p7 = por %p198_p13, %p69_p0 }
  0x38   : > { %s3390_s11 = scalar_select %p2906_p1, 1, 0 }
  0x39   : > { %p2916_p5 = por %p3367_p10, %p3391_p4  ;;  %p205_p9 = scmp.lt.s32.totalorder %s2757_s24, 3 }
  0x3a   : > { %s3393_s26 = scalar_select %p2920_p7, 1, 0 }
  0x3b   : > { %s3392_s13 = scalar_select %p2916_p5, 1, 0 }
  0x3c   : > { %3394 = sst [smem:[#allocation22_spill]] %s3393_s26  ;;  %p2926_p12 = pnand %p1571_p2, %p205_p9 }
  0x3d   : > { %s2760_s7 = smov [#allocation2]   ;;  %s3366_s8 = sshll.u32 %s2757_s24, 11 }
  0x3e   : > { %s3395_s27 = scalar_select %p2926_p12, 1, 0 }
  0x3f   : > { %s217_s29 = sshll.u32 %s2760_s7, 4  ;;  %p2454_p4 = pneg %p2926_p12  ;;  %s2930_s29 = int_to_ptr.vmem [resolvable:$true] %s217_s29 }
  0x40   : > { %s3396_s2 = sld [smem:[#allocation24_spill]] }
  0x41   : > { %p2944_p0 = pnand %p2454_p4, %p3369_p3 }
  0x43   : > { %s3397_s20 = scalar_select %p2944_p0, 1, 0 }
  0x46   : > { %s2940_s12 = scalar_lea.hbm %s3396_s2, %s3366_s8  ;;  %s2570_s9 = scalar_lea.hbm %s3396_s2, 4096 }
  0x47   : > { %s2565_s7 = scalar_lea.hbm %s2940_s12, 2048  ;;  %p2571_p10 = scmp.lt.u32.totalorder %s2940_s12, %s3396_s2 }
  0x48   : > { %p2566_p13 = scmp.ne.s32.totalorder %s2940_s12, %s2565_s7  ;;  %p2572_p11 = scmp.lt.u32.totalorder %s2570_s9, %s2565_s7 }
  0x49   : > { %p2574_p5 = scmp.lt.u32.totalorder %s2565_s7, %s2940_s12 }
  0x4a   : > { %p2568_p2 = pnand %p2566_p13, %p2868_p8  ;;  %p2573_p7 = por %p2572_p11, %p2571_p10 }
  0x4c   : > { %p2569_p9 = pneg %p2568_p2  ;;  %p2575_p4 = por %p2574_p5, %p2573_p7 }
  0x4e   : > { %p2576_p3 = pnand %p2575_p4, %p2569_p9 }
  0x50   : > { %2579 = shalt.err (!%p2576_p3)
}
  0x51   : > { %s2580_s28 = scalar_lea.vmem %s2894_s17, 2048  ;;  %s2761_s1 = smov [#allocation7]  }
  0x52   : > { %p2581_p13 = scmp.ne.s32.totalorder %s2894_s17, %s2580_s28  ;;  %s2585_s15 = sshll.u32 %s2761_s1, 4  ;;  %s2586_s15 = int_to_ptr.vmem [resolvable:$false] %s2585_s15 }
  0x53   : > { %s2587_s8 = scalar_lea.vmem %s2586_s15, 4096  ;;  %p2588_p12 = scmp.lt.s32.totalorder %s2894_s17, %s2586_s15 }
  0x54   : > { %p2583_p2 = pnand %p2581_p13, %p2868_p8  ;;  %p2589_p0 = scmp.lt.s32.totalorder %s2587_s8, %s2580_s28 }
  0x56   : > { %p2584_p1 = pneg %p2583_p2  ;;  %p2590_p10 = por %p2589_p0, %p2588_p12 }
  0x58   : > { %p2591_p11 = pnand %p2590_p10, %p2584_p1 }
  0x5a   : > { %2594 = shalt.err (!%p2591_p11)
}
  0x5b   : > { %s2762_s7 = smov 128   ;;  %s2763_s9 = smov 8  }
  0x5c   : > { %2464 = dma.hbm_to_vmem [thread:$0]  (!%p2855_p6), %s2940_s12, 2048, %s2894_s17, %s2862_s16, %s2762_s7, %s2762_s7, %s2763_s9  }
  0x5d   : > { %s3398_s10 = sshll.u32 %s2757_s24, 11  ;;  %s2595_s23 = scalar_lea.hbm %s3357_s0, 1024 }
  0x5e   : > { %s2978_s28 = scalar_lea.hbm %s3360_s3, %s3398_s10  ;;  %p2596_p3 = scmp.ne.s32.totalorder %s3357_s0, %s2595_s23 }
  0x5f   : > { %p3399_p1 = scmp.ne.s32.totalorder %s3397_s20, 0  ;;  %p2602_p0 = scmp.lt.u32.totalorder %s2595_s23, %s3357_s0 }
  0x61   : > { %p2597_p5 = pneg %p3399_p1 }
  0x63   : > { %p2598_p7 = pnand %p2597_p5, %p2596_p3 }
  0x65   : > { %p2599_p12 = pneg %p2598_p7 }
  0x67   : > { %p2604_p9 = pnand %p2602_p0, %p2599_p12 }
  0x69   : > { %2607 = shalt.err (!%p2604_p9)
}
  0x6a   : > { %s2608_s17 = scalar_lea.vmem %s2930_s29, 1024  ;;  %p2616_p10 = scmp.lt.s32.totalorder %s2930_s29, %s2930_s29 }
  0x6b   : > { %p2609_p4 = scmp.ne.s32.totalorder %s2930_s29, %s2608_s17  ;;  %p2617_p11 = scmp.lt.s32.totalorder %s2608_s17, %s2608_s17 }
  0x6d   : > { %p2611_p13 = pnand %p2609_p4, %p2597_p5  ;;  %p2618_p6 = por %p2617_p11, %p2616_p10 }
  0x6f   : > { %p2612_p2 = pneg %p2611_p13 }
  0x71   : > { %p2619_p8 = pnand %p2618_p6, %p2612_p2 }
  0x73   : > { %2622 = shalt.err (!%p2619_p8)
}
  0x74   : > { %2457 = dma.hbm_to_vmem [thread:$0]  (!%p3399_p1), %s3357_s0, 1024, %s2930_s29, [#allocation3], %s2762_s7, %s2762_s7, %s2763_s9  }
  0x75   : > { %s3400_s23 = sshll.u32 %s2846_s30, 7  ;;  %s271_s12 = scalar_lea.sflag [#allocation9], %s2846_s30 }
  0x76   : > { %s274_s25 = scalar_lea.vmem [#allocation8], %s3400_s23  ;;  %s2623_s20 = scalar_lea.hbm %s2978_s28, 2048 }
  0x77   : > { %s281_s26 = sshll.u32 %s274_s25, 4  ;;  %p2624_p6 = scmp.ne.s32.totalorder %s2978_s28, %s2623_s20  ;;  %s3006_s26 = int_to_ptr.vmem [resolvable:$true] %s281_s26 }
  0x78   : > { %p3401_p8 = scmp.ne.s32.totalorder %s3389_s18, 0  ;;  %s2628_s15 = scalar_lea.hbm %s3360_s3, 4096 }
  0x79   : > { %p2629_p7 = scmp.lt.u32.totalorder %s2978_s28, %s3360_s3  ;;  %p2630_p1 = scmp.lt.u32.totalorder %s2628_s15, %s2623_s20 }
  0x7a   : > { %p2626_p3 = pnand %p2624_p6, %p3401_p8  ;;  %p2632_p0 = scmp.lt.u32.totalorder %s2623_s20, %s2978_s28 }
  0x7b   : > { %p2631_p12 = por %p2630_p1, %p2629_p7 }
  0x7c   : > { %p2627_p5 = pneg %p2626_p3 }
  0x7d   : > { %p2633_p9 = por %p2632_p0, %p2631_p12 }
  0x7f   : > { %p2634_p4 = pnand %p2633_p9, %p2627_p5 }
  0x81   : > { %2637 = shalt.err (!%p2634_p4)
}
  0x82   : > { %s2638_s29 = scalar_lea.vmem %s3006_s26, 2048  ;;  %s2764_s17 = smov [#allocation8]  }
  0x83   : > { %p2639_p13 = scmp.ne.s32.totalorder %s3006_s26, %s2638_s29  ;;  %s2643_s2 = sshll.u32 %s2764_s17, 4  ;;  %s2644_s2 = int_to_ptr.vmem [resolvable:$false] %s2643_s2 }
  0x84   : > { %s2645_s21 = scalar_lea.vmem %s2644_s2, 4096  ;;  %p2646_p11 = scmp.lt.s32.totalorder %s3006_s26, %s2644_s2 }
  0x85   : > { %p2641_p2 = pnand %p2639_p13, %p3401_p8  ;;  %p2647_p6 = scmp.lt.s32.totalorder %s2645_s21, %s2638_s29 }
  0x87   : > { %p2642_p10 = pneg %p2641_p2  ;;  %p2648_p3 = por %p2647_p6, %p2646_p11 }
  0x89   : > { %p2649_p7 = pnand %p2648_p3, %p2642_p10 }
  0x8b   : > { %2652 = shalt.err (!%p2649_p7)
}
  0x8c   : > { %p3402_p5 = scmp.ne.s32.totalorder %s3388_s14, 0  ;;  %p3403_p8 = scmp.ne.s32.totalorder %s3395_s27, 0 }
  0x8d   : > { %p3404_p1 = scmp.eq.s32.totalorder (!%p3403_p8), %s2897_s19, 0 }
  0x8e   : > { %2467 = dma.hbm_to_vmem [thread:$0]  (!%p3402_p5), %s2978_s28, 2048, %s3006_s26, %s271_s12, %s2762_s7, %s2762_s7, %s2763_s9  }
  0x8f   : > { %299 = sbr.rel (%p3403_p8) target bundleno = 2550 (0x9f6), region = 40 }
  0x96   : > { %2724 = dma.done.wait (%p3404_p1), [#allocation3], 1024   ;;  %p3405_p12 = pmov %p3404_p1 }
  0x97   : > { %s305_s14 = sand.u32 1, %s2897_s19   ;;  %s3043_s18 = sand.u32 1, %s2749_s22  }
  0x98   : > { %2726 = vsyncadd (%p3405_p12), [#allocation3], 4294966272  ;;  %s1584_s30 = sshll.u32 %s3043_s18, 3  ;;  %s306_s23 = scalar_lea.sflag [#allocation6], %s305_s14 }
  0x99   : > { %s3046_s25 = scalar_lea.vmem [#allocation5], %s1584_s30  ;;  %p3406_p0 = scmp.ne.s32.totalorder %s3390_s11, 0 }
  0x9b   : > { %2728 = dma.done.wait (%p3406_p0), %s306_s23, 2176  }
  0x9c   : > { %2730 = vsyncadd (%p3406_p0), %s306_s23, 4294965120  ;;  %s1585_s27 = sshll.u32 %s3043_s18, 7  ;;  %s324_s9 = scalar_lea.sflag [#allocation9], %s3043_s18 }
  0x9d   : > { %s3053_s7 = scalar_lea.vmem [#allocation7], %s1585_s27  ;;  %s3056_s28 = scalar_lea.vmem [#allocation8], %s1585_s27 }
  0x9e   : > { %2732 = dma.done.wait (%p3406_p0), %s324_s9, 2048  }
  0x9f   : > { %2734 = vsyncadd (%p3406_p0), %s324_s9, 4294965248  ;;  %p369_p9 = scmp.lt.s32.totalorder %s2897_s19, 1  ;;  %s3069_s1 = scalar_lea.vmem [#allocation11], %s1584_s30 }
  0xa0   : > { %p3407_p4 = scmp.ne.s32.totalorder %s2897_s19, 0 }
  0xa1   : > { %s370_s26 = scalar_select %p369_p9, %s2897_s19, 1 }
  0xa2   : > { %376 = sbr.rel (%p3407_p4) target bundleno = 417 (0x1a1), region = 60  ;;  %v385_v1 = vld [vmem:[%s3053_s7] sm:$0xff] (!%p3407_p4)  ;;  %v386_v2 = vld [vmem:[%s3053_s7 + $0x8] sm:$0xff] (!%p3407_p4)  ;;  %v387_v3 = vld [vmem:[%s3053_s7 + $0x10] sm:$0xff] (!%p3407_p4)  ;;  %v402_v33 = vlaneseq (!%p3407_p4) }
  0xa3   : > { %s371_s10 = scalar_lea.vmem %s3361_s4, %s370_s26  ;;  %v2150_v4 = vpack.c.bf16 (!%p3407_p4), %v386_v2, %v385_v1  ;;  %v388_v5 = vld [vmem:[%s3053_s7 + $0x18] sm:$0xff] (!%p3407_p4)  ;;  %v389_v7 = vld [vmem:[%s3053_s7 + $0x20] sm:$0xff] (!%p3407_p4)  ;;  %v390_v8 = vld [vmem:[%s3053_s7 + $0x28] sm:$0xff] (!%p3407_p4) }
  0xa4   : > { %v3067_v0 = vld [vmem:[%s371_s10] sm:$0x1]  ;;  %v2154_v6 = vpack.c.bf16 (!%p3407_p4), %v388_v5, %v387_v3  ;;  %v2158_v9 = vpack.c.bf16 (!%p3407_p4), %v390_v8, %v389_v7  ;;  %v392_v13 = vld [vmem:[%s3053_s7 + $0x38] sm:$0xff] (!%p3407_p4)  ;;  %v393_v15 = vld [vmem:[%s3053_s7 + $0x40] sm:$0xff] (!%p3407_p4)  ;;  %v403_v34 = vshrl.u32 (!%p3407_p4), %v402_v33, 7 }
  0xa5   : > { %2151 = vmatprep.subr.bf16.mxu0 (!%p3407_p4), %v2150_v4  ;;  %2406 = vmatprep.subr.bf16.mxu1 (!%p3407_p4), %v2150_v4  ;;  %v377_v10 = vld [vmem:[#allocation2] sm:$0xff] (!%p3407_p4)  ;;  %v394_v16 = vld [vmem:[%s3053_s7 + $0x48] sm:$0xff] (!%p3407_p4)  ;;  %v396_v19 = vld [vmem:[%s3053_s7 + $0x58] sm:$0xff] (!%p3407_p4) }
  0xa6   : > { %2153 = vmatpush3.bf16.msra.mxu0 (!%p3407_p4), %v2150_v4  ;;  %2414 = vmatpush3.bf16.msra.mxu1 (!%p3407_p4), %v2150_v4  ;;  %v381_v11 = vld [vmem:[#allocation2 + $0x20] sm:$0xff] (!%p3407_p4)  ;;  %v2166_v17 = vpack.c.bf16 (!%p3407_p4), %v394_v16, %v393_v15  ;;  %v397_v21 = vld [vmem:[%s3053_s7 + $0x60] sm:$0xff] (!%p3407_p4)  ;;  %v398_v22 = vld [vmem:[%s3053_s7 + $0x68] sm:$0xff] (!%p3407_p4)  ;;  %v404_v35 = vsub.s32 (!%p3407_p4), 0, %v403_v34 }
  0xa7   : > { %2155 = vmatprep.subr.bf16.mxu0 (!%p3407_p4), %v2154_v6  ;;  %2407 = vmatprep.subr.bf16.mxu1 (!%p3407_p4), %v2154_v6  ;;  %v391_v12 = vld [vmem:[%s3053_s7 + $0x30] sm:$0xff] (!%p3407_p4)  ;;  %v2174_v23 = vpack.c.bf16 (!%p3407_p4), %v398_v22, %v397_v21  ;;  %v400_v25 = vld [vmem:[%s3053_s7 + $0x78] sm:$0xff] (!%p3407_p4)  ;;  %v379_v29 = vld [vmem:[#allocation2 + $0x10] sm:$0xff] (!%p3407_p4) }
  0xa8   : > { %1814 = vmatprep.mubr.f32.mxu0 (!%p3407_p4), %v377_v10  ;;  %1820 = vmatprep.mubr.f32.mxu1 (!%p3407_p4), %v381_v11  ;;  %v2162_v14 = vpack.c.bf16 (!%p3407_p4), %v392_v13, %v391_v12  ;;  %v395_v18 = vld [vmem:[%s3053_s7 + $0x50] sm:$0xff] (!%p3407_p4)  ;;  %v378_v27 = vld [vmem:[#allocation2 + $0x8] sm:$0xff] (!%p3407_p4)  ;;  %v383_v30 = vld [vmem:[#allocation2 + $0x30] sm:$0xff] (!%p3407_p4)  ;;  %v405_v36 = vrot.slane (!%p3407_p4), %v3067_v0, %v404_v35 }
  0xa9   : > { %v2170_v20 = vpack.c.bf16 %v396_v19, %v395_v18  ;;  %v399_v24 = vld [vmem:[%s3053_s7 + $0x70] sm:$0xff]  ;;  %v382_v28 = vld [vmem:[#allocation2 + $0x28] sm:$0xff]  ;;  %v380_v31 = vld [vmem:[#allocation2 + $0x18] sm:$0xff] }
  0xaa   : > { %2157 = vmatpush3.bf16.msra.mxu0 %v2154_v6  ;;  %2415 = vmatpush3.bf16.msra.mxu1 %v2154_v6  ;;  %v2178_v26 = vpack.c.bf16 %v400_v25, %v399_v24  ;;  %v384_v32 = vld [vmem:[#allocation2 + $0x38] sm:$0xff] }
  0xab   : > { %2159 = vmatprep.subr.bf16.mxu0 %v2158_v9  ;;  %2408 = vmatprep.subr.bf16.mxu1 %v2158_v9 }
  0xae   : > { %2161 = vmatpush3.bf16.msra.mxu0 %v2158_v9  ;;  %2416 = vmatpush3.bf16.msra.mxu1 %v2158_v9 }
  0xaf   : > { %2163 = vmatprep.subr.bf16.mxu0 %v2162_v14  ;;  %2409 = vmatprep.subr.bf16.mxu1 %v2162_v14 }
  0xb2   : > { %2165 = vmatpush3.bf16.msra.mxu0 %v2162_v14  ;;  %2417 = vmatpush3.bf16.msra.mxu1 %v2162_v14 }
  0xb3   : > { %2167 = vmatprep.subr.bf16.mxu0 %v2166_v17  ;;  %2410 = vmatprep.subr.bf16.mxu1 %v2166_v17 }
  0xb6   : > { %2169 = vmatpush3.bf16.msra.mxu0 %v2166_v17  ;;  %2418 = vmatpush3.bf16.msra.mxu1 %v2166_v17 }
  0xb7   : > { %2171 = vmatprep.subr.bf16.mxu0 %v2170_v20  ;;  %2411 = vmatprep.subr.bf16.mxu1 %v2170_v20 }
  0xba   : > { %2173 = vmatpush3.bf16.msra.mxu0 %v2170_v20  ;;  %2419 = vmatpush3.bf16.msra.mxu1 %v2170_v20 }
  0xbb   : > { %2175 = vmatprep.subr.bf16.mxu0 %v2174_v23  ;;  %2412 = vmatprep.subr.bf16.mxu1 %v2174_v23 }
  0xbe   : > { %2177 = vmatpush3.bf16.msra.mxu0 %v2174_v23  ;;  %2420 = vmatpush3.bf16.msra.mxu1 %v2174_v23 }
  0xbf   : > { %2179 = vmatprep.subr.bf16.mxu0 %v2178_v26  ;;  %2413 = vmatprep.subr.bf16.mxu1 %v2178_v26 }
  0xc2   : > { %2181 = vmatpush3.bf16.msra.mxu0 %v2178_v26  ;;  %2421 = vmatpush3.bf16.msra.mxu1 %v2178_v26 }
  0xc5   : > { %1815 = vmatmul.mubr.f32.vlgmr.msra.gmra.mrb[0].mxu0 %v378_v27  ;;  %1821 = vmatmul.mubr.f32.vlgmr.msra.gmra.mrb[0].mxu1 %v382_v28 }
  0xc6   : > { %1817 = vmatprep.mubr.f32.mxu0 %v379_v29  ;;  %1823 = vmatprep.mubr.f32.mxu1 %v383_v30 }
  0xc9   : > { %1818 = vmatmul.mubr.f32.gmra.mrb[2].mxu0 %v380_v31  ;;  %1824 = vmatmul.mubr.f32.gmra.mrb[2].mxu1 %v384_v32 }
 0x198   : > { %v1816_v37 = vpop.f32.mrb[0].mxu0  ;;  %v1822_v38 = vpop.f32.mrb[0].mxu1 }
 0x199   : > { %v479_v39 = vadd.f32 %v1816_v37, %v405_v36  ;;  %v499_v40 = vadd.f32 %v1822_v38, %v405_v36  ;;  %v473_v41 = vpop.f32.mrb[1].mxu0  ;;  %v493_v42 = vpop.f32.mrb[1].mxu1 }
 0x19a   : > { %v474_v43 = vadd.f32 %v473_v41, %v405_v36  ;;  %v494_v44 = vadd.f32 %v493_v42, %v405_v36 }
 0x19b   : > { %513 = vst [vmem:[#allocation10 + $0x8] sm:$0xff] %v479_v39  ;;  %517 = vst [vmem:[#allocation10 + $0x28] sm:$0xff] %v499_v40 }
 0x19c   : > { %512 = vst [vmem:[#allocation10] sm:$0xff] %v474_v43  ;;  %516 = vst [vmem:[#allocation10 + $0x20] sm:$0xff] %v494_v44  ;;  %v1819_v45 = vpop.f32.mrb[2].mxu0  ;;  %v1825_v46 = vpop.f32.mrb[2].mxu1 }
 0x19d   : > { %v489_v47 = vadd.f32 %v1819_v45, %v405_v36  ;;  %v509_v48 = vadd.f32 %v1825_v46, %v405_v36  ;;  %v483_v49 = vpop.f32.mrb[3].mxu0  ;;  %v503_v50 = vpop.f32.mrb[3].mxu1 }
 0x19e   : > { %v484_v51 = vadd.f32 %v483_v49, %v405_v36  ;;  %v504_v52 = vadd.f32 %v503_v50, %v405_v36 }
 0x19f   : > { %515 = vst [vmem:[#allocation10 + $0x18] sm:$0xff] %v489_v47  ;;  %519 = vst [vmem:[#allocation10 + $0x38] sm:$0xff] %v509_v48 }
 0x1a0   : > { %514 = vst [vmem:[#allocation10 + $0x10] sm:$0xff] %v484_v51  ;;  %518 = vst [vmem:[#allocation10 + $0x30] sm:$0xff] %v504_v52 }
 0x1a1 PF: > { %p1589_p13 = scmp.le.s32.totalorder %s2897_s19, 0 }
 0x1a2   : > { %v532_v53 = vld [vmem:[%s3053_s7] sm:$0xff] (!%p1589_p13)  ;;  %v533_v54 = vld [vmem:[%s3053_s7 + $0x8] sm:$0xff] (!%p1589_p13)  ;;  %v534_v55 = vld [vmem:[%s3053_s7 + $0x10] sm:$0xff] (!%p1589_p13)  ;;  %v549_v22 = vlaneseq (!%p1589_p13) }
 0x1a3   : > { %523 = sbr.rel (%p1589_p13) target bundleno = 673 (0x2a1), region = 64  ;;  %v2182_v56 = vpack.c.bf16 (!%p1589_p13), %v533_v54, %v532_v53  ;;  %v535_v57 = vld [vmem:[%s3053_s7 + $0x18] sm:$0xff] (!%p1589_p13)  ;;  %v536_v59 = vld [vmem:[%s3053_s7 + $0x20] sm:$0xff] (!%p1589_p13)  ;;  %v537_v60 = vld [vmem:[%s3053_s7 + $0x28] sm:$0xff] (!%p1589_p13) }
 0x1a4   : > { %v2186_v58 = vpack.c.bf16 (!%p1589_p13), %v535_v57, %v534_v55  ;;  %v2190_v61 = vpack.c.bf16 (!%p1589_p13), %v537_v60, %v536_v59  ;;  %v524_v62 = vld [vmem:[#allocation10] sm:$0xff] (!%p1589_p13)  ;;  %v538_v1 = vld [vmem:[%s3053_s7 + $0x30] sm:$0xff] (!%p1589_p13)  ;;  %v539_v2 = vld [vmem:[%s3053_s7 + $0x38] sm:$0xff] (!%p1589_p13)  ;;  %v550_v23 = vshrl.u32 (!%p1589_p13), %v549_v22, 7 }
 0x1a5   : > { %2183 = vmatprep.subr.bf16.mxu0 (!%p1589_p13), %v2182_v56  ;;  %2422 = vmatprep.subr.bf16.mxu1 (!%p1589_p13), %v2182_v56  ;;  %v528_v63 = vld [vmem:[#allocation10 + $0x20] sm:$0xff] (!%p1589_p13)  ;;  %v2194_v3 = vpack.c.bf16 (!%p1589_p13), %v539_v2, %v538_v1  ;;  %v541_v5 = vld [vmem:[%s3053_s7 + $0x48] sm:$0xff] (!%p1589_p13)  ;;  %v542_v7 = vld [vmem:[%s3053_s7 + $0x50] sm:$0xff] (!%p1589_p13) }
 0x1a6   : > { %2185 = vmatpush3.bf16.msra.mxu0 (!%p1589_p13), %v2182_v56  ;;  %2430 = vmatpush3.bf16.msra.mxu1 (!%p1589_p13), %v2182_v56  ;;  %v540_v4 = vld [vmem:[%s3053_s7 + $0x40] sm:$0xff] (!%p1589_p13)  ;;  %v543_v8 = vld [vmem:[%s3053_s7 + $0x58] sm:$0xff] (!%p1589_p13)  ;;  %v545_v11 = vld [vmem:[%s3053_s7 + $0x68] sm:$0xff] (!%p1589_p13)  ;;  %v551_v24 = vsub.s32 (!%p1589_p13), 0, %v550_v23 }
 0x1a7   : > { %2187 = vmatprep.subr.bf16.mxu0 (!%p1589_p13), %v2186_v58  ;;  %2423 = vmatprep.subr.bf16.mxu1 (!%p1589_p13), %v2186_v58  ;;  %v2198_v6 = vpack.c.bf16 (!%p1589_p13), %v541_v5, %v540_v4  ;;  %v2202_v9 = vpack.c.bf16 (!%p1589_p13), %v543_v8, %v542_v7  ;;  %v544_v10 = vld [vmem:[%s3053_s7 + $0x60] sm:$0xff] (!%p1589_p13)  ;;  %v546_v13 = vld [vmem:[%s3053_s7 + $0x70] sm:$0xff] (!%p1589_p13)  ;;  %v547_v14 = vld [vmem:[%s3053_s7 + $0x78] sm:$0xff] (!%p1589_p13) }
 0x1a8   : > { %1858 = vmatprep.mubr.f32.mxu0 (!%p1589_p13), %v524_v62  ;;  %1864 = vmatprep.mubr.f32.mxu1 (!%p1589_p13), %v528_v63  ;;  %v2206_v12 = vpack.c.bf16 (!%p1589_p13), %v545_v11, %v544_v10  ;;  %v2210_v15 = vpack.c.bf16 (!%p1589_p13), %v547_v14, %v546_v13  ;;  %v525_v16 = vld [vmem:[#allocation10 + $0x8] sm:$0xff] (!%p1589_p13)  ;;  %v526_v18 = vld [vmem:[#allocation10 + $0x10] sm:$0xff] (!%p1589_p13)  ;;  %v527_v20 = vld [vmem:[#allocation10 + $0x18] sm:$0xff] (!%p1589_p13)  ;;  %v552_v25 = vrot.slane (!%p1589_p13), %v3067_v0, %v551_v24 }
 0x1a9   : > { %v529_v17 = vld [vmem:[#allocation10 + $0x28] sm:$0xff] (!%p1589_p13)  ;;  %v530_v19 = vld [vmem:[#allocation10 + $0x30] sm:$0xff] (!%p1589_p13)  ;;  %v531_v21 = vld [vmem:[#allocation10 + $0x38] sm:$0xff] (!%p1589_p13) }
 0x1aa   : > { %2189 = vmatpush3.bf16.msra.mxu0 %v2186_v58  ;;  %2431 = vmatpush3.bf16.msra.mxu1 %v2186_v58 }
 0x1ab   : > { %2191 = vmatprep.subr.bf16.mxu0 %v2190_v61  ;;  %2424 = vmatprep.subr.bf16.mxu1 %v2190_v61 }
 0x1ae   : > { %2193 = vmatpush3.bf16.msra.mxu0 %v2190_v61  ;;  %2432 = vmatpush3.bf16.msra.mxu1 %v2190_v61 }
 0x1af   : > { %2195 = vmatprep.subr.bf16.mxu0 %v2194_v3  ;;  %2425 = vmatprep.subr.bf16.mxu1 %v2194_v3 }
 0x1b2   : > { %2197 = vmatpush3.bf16.msra.mxu0 %v2194_v3  ;;  %2433 = vmatpush3.bf16.msra.mxu1 %v2194_v3 }
 0x1b3   : > { %2199 = vmatprep.subr.bf16.mxu0 %v2198_v6  ;;  %2426 = vmatprep.subr.bf16.mxu1 %v2198_v6 }
 0x1b6   : > { %2201 = vmatpush3.bf16.msra.mxu0 %v2198_v6  ;;  %2434 = vmatpush3.bf16.msra.mxu1 %v2198_v6 }
 0x1b7   : > { %2203 = vmatprep.subr.bf16.mxu0 %v2202_v9  ;;  %2427 = vmatprep.subr.bf16.mxu1 %v2202_v9 }
 0x1ba   : > { %2205 = vmatpush3.bf16.msra.mxu0 %v2202_v9  ;;  %2435 = vmatpush3.bf16.msra.mxu1 %v2202_v9 }
 0x1bb   : > { %2207 = vmatprep.subr.bf16.mxu0 %v2206_v12  ;;  %2428 = vmatprep.subr.bf16.mxu1 %v2206_v12 }
 0x1be   : > { %2209 = vmatpush3.bf16.msra.mxu0 %v2206_v12  ;;  %2436 = vmatpush3.bf16.msra.mxu1 %v2206_v12 }
 0x1bf   : > { %2211 = vmatprep.subr.bf16.mxu0 %v2210_v15  ;;  %2429 = vmatprep.subr.bf16.mxu1 %v2210_v15 }
 0x1c2   : > { %2213 = vmatpush3.bf16.msra.mxu0 %v2210_v15  ;;  %2437 = vmatpush3.bf16.msra.mxu1 %v2210_v15 }
 0x1c5   : > { %1859 = vmatmul.mubr.f32.vlgmr.msra.gmra.mrb[0].mxu0 %v525_v16  ;;  %1865 = vmatmul.mubr.f32.vlgmr.msra.gmra.mrb[0].mxu1 %v529_v17 }
 0x1c6   : > { %1861 = vmatprep.mubr.f32.mxu0 %v526_v18  ;;  %1867 = vmatprep.mubr.f32.mxu1 %v530_v19 }
 0x1c9   : > { %1862 = vmatmul.mubr.f32.gmra.mrb[2].mxu0 %v527_v20  ;;  %1868 = vmatmul.mubr.f32.gmra.mrb[2].mxu1 %v531_v21 }
 0x298   : > { %v1860_v26 = vpop.f32.mrb[0].mxu0  ;;  %v1866_v27 = vpop.f32.mrb[0].mxu1 }
 0x299   : > { %v626_v28 = vadd.f32 %v1860_v26, %v552_v25  ;;  %v646_v29 = vadd.f32 %v1866_v27, %v552_v25  ;;  %v620_v30 = vpop.f32.mrb[1].mxu0  ;;  %v640_v31 = vpop.f32.mrb[1].mxu1 }
 0x29a   : > { %v621_v32 = vadd.f32 %v620_v30, %v552_v25  ;;  %v641_v33 = vadd.f32 %v640_v31, %v552_v25 }
 0x29b   : > { %660 = vst [vmem:[#allocation10 + $0x8] sm:$0xff] %v626_v28  ;;  %664 = vst [vmem:[#allocation10 + $0x28] sm:$0xff] %v646_v29 }
 0x29c   : > { %659 = vst [vmem:[#allocation10] sm:$0xff] %v621_v32  ;;  %663 = vst [vmem:[#allocation10 + $0x20] sm:$0xff] %v641_v33  ;;  %v1863_v34 = vpop.f32.mrb[2].mxu0  ;;  %v1869_v35 = vpop.f32.mrb[2].mxu1 }
 0x29d   : > { %v636_v36 = vadd.f32 %v1863_v34, %v552_v25  ;;  %v656_v37 = vadd.f32 %v1869_v35, %v552_v25  ;;  %v630_v38 = vpop.f32.mrb[3].mxu0  ;;  %v650_v39 = vpop.f32.mrb[3].mxu1 }
 0x29e   : > { %v631_v40 = vadd.f32 %v630_v38, %v552_v25  ;;  %v651_v0 = vadd.f32 %v650_v39, %v552_v25 }
 0x29f   : > { %662 = vst [vmem:[#allocation10 + $0x18] sm:$0xff] %v636_v36  ;;  %666 = vst [vmem:[#allocation10 + $0x38] sm:$0xff] %v656_v37 }
 0x2a0   : > { %661 = vst [vmem:[#allocation10 + $0x10] sm:$0xff] %v631_v40  ;;  %665 = vst [vmem:[#allocation10 + $0x30] sm:$0xff] %v651_v0 }
 0x2a1 PF: > { %v669_v41 = vld [vmem:[%s3056_s28] sm:$0xff]  ;;  %v670_v42 = vld [vmem:[%s3056_s28 + $0x8] sm:$0xff]  ;;  %v671_v43 = vld [vmem:[%s3056_s28 + $0x10] sm:$0xff]  ;;  %v2765_v44 = vmov 0.0|0.0   ;;  %vm2766_vm0 = vmmov 0   ;;  %v2767_v47 = vmov 0.0  }
 0x2a2   : > { %2214 = vmatprep.subr.bf16.mxu0 %v2765_v44  ;;  %v3112_v45 = vpack.c.bf16 %v670_v42, %v669_v41  ;;  %v672_v46 = vld [vmem:[%s3056_s28 + $0x18] sm:$0xff]  ;;  %1902 = vmatprep.mubr.msk.f32.mxu0 %vm2766_vm0, %v2767_v47  ;;  %v673_v49 = vld [vmem:[%s3056_s28 + $0x20] sm:$0xff]  ;;  %v674_v50 = vld [vmem:[%s3056_s28 + $0x28] sm:$0xff]  ;;  %s2768_s11 = smov [#allocation10]   ;;  %s1592_s8 = sshll.u32 %s2897_s19, 7 }
 0x2a3   : > { %2238 = vmatprep.subr.bf16.mxu1 %v2765_v44  ;;  %1937 = vmatprep.mubr.msk.f32.mxu1 %vm2766_vm0, %v2767_v47  ;;  %v3121_v48 = vpack.c.bf16 %v672_v46, %v671_v43  ;;  %v3129_v51 = vpack.c.bf16 %v674_v50, %v673_v49  ;;  %v675_v52 = vld [vmem:[%s3056_s28 + $0x30] sm:$0xff]  ;;  %v676_v53 = vld [vmem:[%s3056_s28 + $0x38] sm:$0xff]  ;;  %v677_v55 = vld [vmem:[%s3056_s28 + $0x40] sm:$0xff]  ;;  %s1407_s15 = sshll.u32 %s2768_s11, 4  ;;  %s1423_s16 = sshll.u32 %s3069_s1, 4  ;;  %s1408_s15 = int_to_ptr.vmem [resolvable:$true] %s1407_s15  ;;  %s3292_s16 = int_to_ptr.vmem [resolvable:$true] %s1423_s16 }
 0x2a4   : > { %2216 = vmatpush3.bf16.msra.mxu0 %v3112_v45  ;;  %2240 = vmatpush3.bf16.msra.mxu1 %v3112_v45  ;;  %v3137_v54 = vpack.c.bf16 %v676_v53, %v675_v52  ;;  %v678_v56 = vld [vmem:[%s3056_s28 + $0x48] sm:$0xff]  ;;  %v679_v58 = vld [vmem:[%s3056_s28 + $0x50] sm:$0xff]  ;;  %v680_v59 = vld [vmem:[%s3056_s28 + $0x58] sm:$0xff]  ;;  %s3290_s2 = scalar_lea.hbm %s3363_s6, %s1592_s8  ;;  %s2653_s21 = scalar_lea.vmem %s1408_s15, 1024 }
 0x2a5   : > { %2217 = vmatprep.subr.bf16.mxu0 %v2765_v44  ;;  %2241 = vmatprep.subr.bf16.mxu1 %v2765_v44  ;;  %v3145_v57 = vpack.c.bf16 %v678_v56, %v677_v55  ;;  %v3153_v60 = vpack.c.bf16 %v680_v59, %v679_v58  ;;  %v681_v61 = vld [vmem:[%s3056_s28 + $0x60] sm:$0xff]  ;;  %v682_v62 = vld [vmem:[%s3056_s28 + $0x68] sm:$0xff]  ;;  %v683_v1 = vld [vmem:[%s3056_s28 + $0x70] sm:$0xff]  ;;  %p2654_p2 = scmp.ne.s32.totalorder %s1408_s15, %s2653_s21  ;;  %p3408_p10 = scmp.eq.s32.totalorder %s2897_s19, 1 }
 0x2a6   : > { %v3161_v63 = vpack.c.bf16 %v682_v62, %v681_v61  ;;  %v684_v2 = vld [vmem:[%s3056_s28 + $0x78] sm:$0xff]  ;;  %v668_v5 = vld [vmem:[#allocation10] sm:$0xff]  ;;  %v759_v10 = vld [vmem:[#allocation10 + $0x8] sm:$0xff]  ;;  %p2660_p3 = scmp.lt.s32.totalorder %s1408_s15, %s1408_s15  ;;  %p2661_p7 = scmp.lt.s32.totalorder %s2653_s21, %s2653_s21 }
 0x2a7   : > { %v3169_v3 = vpack.c.bf16 %v684_v2, %v683_v1  ;;  %v667_v4 = vld [vmem:[%s3046_s25] sm:$0xff]  ;;  %v1032_v25 = vld [vmem:[#allocation10 + $0x20] sm:$0xff]  ;;  %v1123_v30 = vld [vmem:[#allocation10 + $0x28] sm:$0xff]  ;;  %p2655_p11 = pnand %p2654_p2, %p3408_p10 }
 0x2a8   : > { %2219 = vmatpush3.bf16.msra.mxu0 %v3121_v48  ;;  %2243 = vmatpush3.bf16.msra.mxu1 %v3121_v48  ;;  %v850_v15 = vld [vmem:[#allocation10 + $0x10] sm:$0xff]  ;;  %v941_v20 = vld [vmem:[#allocation10 + $0x18] sm:$0xff]  ;;  %p2662_p5 = por %p2661_p7, %p2660_p3 }
 0x2a9   : > { %2220 = vmatprep.subr.bf16.mxu0 %v2765_v44  ;;  %2244 = vmatprep.subr.bf16.mxu1 %v2765_v44  ;;  %v1214_v35 = vld [vmem:[#allocation10 + $0x30] sm:$0xff]  ;;  %v1305_v40 = vld [vmem:[#allocation10 + $0x38] sm:$0xff]  ;;  %p2656_p6 = pneg %p2655_p11 }
 0x2ab   : > { %p2663_p8 = pnand %p2662_p5, %p2656_p6 }
 0x2ac   : > { %2222 = vmatpush3.bf16.msra.mxu0 %v3129_v51  ;;  %2246 = vmatpush3.bf16.msra.mxu1 %v3129_v51 }
 0x2ad   : > { %2223 = vmatprep.subr.bf16.mxu0 %v2765_v44  ;;  %2247 = vmatprep.subr.bf16.mxu1 %v2765_v44 }
 0x2b0   : > { %2225 = vmatpush3.bf16.msra.mxu0 %v3137_v54  ;;  %2249 = vmatpush3.bf16.msra.mxu1 %v3137_v54 }
 0x2b1   : > { %2226 = vmatprep.subr.bf16.mxu0 %v2765_v44  ;;  %2250 = vmatprep.subr.bf16.mxu1 %v2765_v44 }
 0x2b4   : > { %2228 = vmatpush3.bf16.msra.mxu0 %v3145_v57  ;;  %2252 = vmatpush3.bf16.msra.mxu1 %v3145_v57 }
 0x2b5   : > { %2229 = vmatprep.subr.bf16.mxu0 %v2765_v44  ;;  %2253 = vmatprep.subr.bf16.mxu1 %v2765_v44 }
 0x2b8   : > { %2231 = vmatpush3.bf16.msra.mxu0 %v3153_v60  ;;  %2255 = vmatpush3.bf16.msra.mxu1 %v3153_v60 }
 0x2b9   : > { %2232 = vmatprep.subr.bf16.mxu0 %v2765_v44  ;;  %2256 = vmatprep.subr.bf16.mxu1 %v2765_v44 }
 0x2bc   : > { %2234 = vmatpush3.bf16.msra.mxu0 %v3161_v63  ;;  %2258 = vmatpush3.bf16.msra.mxu1 %v3161_v63 }
 0x2bd   : > { %2235 = vmatprep.subr.bf16.mxu0 %v2765_v44  ;;  %2259 = vmatprep.subr.bf16.mxu1 %v2765_v44 }
 0x2c0   : > { %2237 = vmatpush3.bf16.msra.mxu0 %v3169_v3  ;;  %2261 = vmatpush3.bf16.msra.mxu1 %v3169_v3 }
 0x2c1   : > { %2262 = vmatprep.subr.bf16.mxu0 %v2765_v44  ;;  %2286 = vmatprep.subr.bf16.mxu1 %v2765_v44 }
 0x2c3   : > { %1903 = vmatmul.mubr.f32.vlgmr.msra.gmra.mrb[0].mxu0 %v667_v4 }
 0x2c4   : > { %2264 = vmatpush3.bf16.msra.mxu0 %v3112_v45  ;;  %1972 = vmatprep.mubr.msk.f32.mxu0 %vm2766_vm0, %v2767_v47 }
 0x2c5   : > { %2265 = vmatprep.subr.bf16.mxu0 %v2765_v44 }
 0x2c8   : > { %2267 = vmatpush3.bf16.msra.mxu0 %v3121_v48 }
 0x2c9   : > { %2268 = vmatprep.subr.bf16.mxu0 %v2765_v44 }
 0x2cc   : > { %2270 = vmatpush3.bf16.msra.mxu0 %v3129_v51 }
 0x2cd   : > { %2271 = vmatprep.subr.bf16.mxu0 %v2765_v44 }
 0x2d0   : > { %2273 = vmatpush3.bf16.msra.mxu0 %v3137_v54 }
 0x2d1   : > { %2274 = vmatprep.subr.bf16.mxu0 %v2765_v44 }
 0x2d4   : > { %2276 = vmatpush3.bf16.msra.mxu0 %v3145_v57 }
 0x2d5   : > { %2277 = vmatprep.subr.bf16.mxu0 %v2765_v44 }
 0x2d8   : > { %2279 = vmatpush3.bf16.msra.mxu0 %v3153_v60 }
 0x2d9   : > { %2280 = vmatprep.subr.bf16.mxu0 %v2765_v44 }
 0x2dc   : > { %2282 = vmatpush3.bf16.msra.mxu0 %v3161_v63 }
 0x2dd   : > { %2283 = vmatprep.subr.bf16.mxu0 %v2765_v44 }
 0x2e0   : > { %2285 = vmatpush3.bf16.msra.mxu0 %v3169_v3 }
 0x2e1   : > { %2310 = vmatprep.subr.bf16.mxu0 %v2765_v44 }
 0x396   : > { %v751_v6 = vpop.f32.mrb[0].mxu0 }
 0x397   : > { %v755_v7 = vadd.f32 %v751_v6, %v668_v5  ;;  %v1904_v8 = vpop.f32.mrb[1].mxu0 }
 0x399   : > { %2519 = vtanh.f32 %v755_v7 }
 0x3a3   : > { %v2520_v9 = vpop.eup %2519 }
 0x3a4   : > { %757 = vst [vmem:[#allocation10] sm:$0xff] %v2520_v9  ;;  %1938 = vmatmul.mubr.f32.vlgmr.msra.gmra.mrb[0].mxu1 %v2520_v9 }
 0x3a5   : > { %2288 = vmatpush3.bf16.msra.mxu1 %v3112_v45  ;;  %2007 = vmatprep.mubr.msk.f32.mxu1 %vm2766_vm0, %v2767_v47 }
 0x3a6   : > { %2289 = vmatprep.subr.bf16.mxu1 %v2765_v44 }
 0x3a9   : > { %2291 = vmatpush3.bf16.msra.mxu1 %v3121_v48 }
 0x3aa   : > { %2292 = vmatprep.subr.bf16.mxu1 %v2765_v44 }
 0x3ad   : > { %2294 = vmatpush3.bf16.msra.mxu1 %v3129_v51 }
 0x3ae   : > { %2295 = vmatprep.subr.bf16.mxu1 %v2765_v44 }
 0x3b1   : > { %2297 = vmatpush3.bf16.msra.mxu1 %v3137_v54 }
 0x3b2   : > { %2298 = vmatprep.subr.bf16.mxu1 %v2765_v44 }
 0x3b5   : > { %2300 = vmatpush3.bf16.msra.mxu1 %v3145_v57 }
 0x3b6   : > { %2301 = vmatprep.subr.bf16.mxu1 %v2765_v44 }
 0x3b9   : > { %2303 = vmatpush3.bf16.msra.mxu1 %v3153_v60 }
 0x3ba   : > { %2304 = vmatprep.subr.bf16.mxu1 %v2765_v44 }
 0x3bd   : > { %2306 = vmatpush3.bf16.msra.mxu1 %v3161_v63 }
 0x3be   : > { %2307 = vmatprep.subr.bf16.mxu1 %v2765_v44 }
 0x3c1   : > { %2309 = vmatpush3.bf16.msra.mxu1 %v3169_v3 }
 0x3c2   : > { %2334 = vmatprep.subr.bf16.mxu1 %v2765_v44 }
 0x477   : > { %v842_v11 = vpop.f32.mrb[0].mxu1 }
 0x478   : > { %v846_v12 = vadd.f32 %v842_v11, %v759_v10  ;;  %v1939_v13 = vpop.f32.mrb[1].mxu1 }
 0x47a   : > { %2521 = vtanh.f32 %v846_v12 }
 0x484   : > { %v2522_v14 = vpop.eup %2521 }
 0x485   : > { %848 = vst [vmem:[#allocation10 + $0x8] sm:$0xff] %v2522_v14  ;;  %1973 = vmatmul.mubr.f32.vlgmr.msra.gmra.mrb[2].mxu0 %v2522_v14 }
 0x486   : > { %2312 = vmatpush3.bf16.msra.mxu0 %v3112_v45  ;;  %2042 = vmatprep.mubr.msk.f32.mxu0 %vm2766_vm0, %v2767_v47 }
 0x487   : > { %2313 = vmatprep.subr.bf16.mxu0 %v2765_v44 }
 0x48a   : > { %2315 = vmatpush3.bf16.msra.mxu0 %v3121_v48 }
 0x48b   : > { %2316 = vmatprep.subr.bf16.mxu0 %v2765_v44 }
 0x48e   : > { %2318 = vmatpush3.bf16.msra.mxu0 %v3129_v51 }
 0x48f   : > { %2319 = vmatprep.subr.bf16.mxu0 %v2765_v44 }
 0x492   : > { %2321 = vmatpush3.bf16.msra.mxu0 %v3137_v54 }
 0x493   : > { %2322 = vmatprep.subr.bf16.mxu0 %v2765_v44 }
 0x496   : > { %2324 = vmatpush3.bf16.msra.mxu0 %v3145_v57 }
 0x497   : > { %2325 = vmatprep.subr.bf16.mxu0 %v2765_v44 }
 0x49a   : > { %2327 = vmatpush3.bf16.msra.mxu0 %v3153_v60 }
 0x49b   : > { %2328 = vmatprep.subr.bf16.mxu0 %v2765_v44 }
 0x49e   : > { %2330 = vmatpush3.bf16.msra.mxu0 %v3161_v63 }
 0x49f   : > { %2331 = vmatprep.subr.bf16.mxu0 %v2765_v44 }
 0x4a2   : > { %2333 = vmatpush3.bf16.msra.mxu0 %v3169_v3 }
 0x4a3   : > { %2358 = vmatprep.subr.bf16.mxu0 %v2765_v44 }
 0x558   : > { %v933_v16 = vpop.f32.mrb[2].mxu0 }
 0x559   : > { %v937_v17 = vadd.f32 %v933_v16, %v850_v15  ;;  %v1974_v18 = vpop.f32.mrb[3].mxu0 }
 0x55b   : > { %2523 = vtanh.f32 %v937_v17 }
 0x565   : > { %v2524_v19 = vpop.eup %2523 }
 0x566   : > { %939 = vst [vmem:[#allocation10 + $0x10] sm:$0xff] %v2524_v19  ;;  %2008 = vmatmul.mubr.f32.vlgmr.msra.gmra.mrb[2].mxu1 %v2524_v19 }
 0x567   : > { %2336 = vmatpush3.bf16.msra.mxu1 %v3112_v45  ;;  %2077 = vmatprep.mubr.msk.f32.mxu1 %vm2766_vm0, %v2767_v47 }
 0x568   : > { %2337 = vmatprep.subr.bf16.mxu1 %v2765_v44 }
 0x56b   : > { %2339 = vmatpush3.bf16.msra.mxu1 %v3121_v48 }
 0x56c   : > { %2340 = vmatprep.subr.bf16.mxu1 %v2765_v44 }
 0x56f   : > { %2342 = vmatpush3.bf16.msra.mxu1 %v3129_v51 }
 0x570   : > { %2343 = vmatprep.subr.bf16.mxu1 %v2765_v44 }
 0x573   : > { %2345 = vmatpush3.bf16.msra.mxu1 %v3137_v54 }
 0x574   : > { %2346 = vmatprep.subr.bf16.mxu1 %v2765_v44 }
 0x577   : > { %2348 = vmatpush3.bf16.msra.mxu1 %v3145_v57 }
 0x578   : > { %2349 = vmatprep.subr.bf16.mxu1 %v2765_v44 }
 0x57b   : > { %2351 = vmatpush3.bf16.msra.mxu1 %v3153_v60 }
 0x57c   : > { %2352 = vmatprep.subr.bf16.mxu1 %v2765_v44 }
 0x57f   : > { %2354 = vmatpush3.bf16.msra.mxu1 %v3161_v63 }
 0x580   : > { %2355 = vmatprep.subr.bf16.mxu1 %v2765_v44 }
 0x583   : > { %2357 = vmatpush3.bf16.msra.mxu1 %v3169_v3 }
 0x584   : > { %2382 = vmatprep.subr.bf16.mxu1 %v2765_v44 }
 0x639   : > { %v1024_v21 = vpop.f32.mrb[2].mxu1 }
 0x63a   : > { %v1028_v22 = vadd.f32 %v1024_v21, %v941_v20  ;;  %v2009_v23 = vpop.f32.mrb[3].mxu1 }
 0x63c   : > { %2525 = vtanh.f32 %v1028_v22 }
 0x646   : > { %v2526_v24 = vpop.eup %2525 }
 0x647   : > { %1030 = vst [vmem:[#allocation10 + $0x18] sm:$0xff] %v2526_v24  ;;  %2043 = vmatmul.mubr.f32.vlgmr.msra.gmra.mrb[4].mxu0 %v2526_v24 }
 0x648   : > { %2360 = vmatpush3.bf16.msra.mxu0 %v3112_v45  ;;  %2112 = vmatprep.mubr.msk.f32.mxu0 %vm2766_vm0, %v2767_v47 }
 0x649   : > { %2361 = vmatprep.subr.bf16.mxu0 %v2765_v44 }
 0x64c   : > { %2363 = vmatpush3.bf16.msra.mxu0 %v3121_v48 }
 0x64d   : > { %2364 = vmatprep.subr.bf16.mxu0 %v2765_v44 }
 0x650   : > { %2366 = vmatpush3.bf16.msra.mxu0 %v3129_v51 }
 0x651   : > { %2367 = vmatprep.subr.bf16.mxu0 %v2765_v44 }
 0x654   : > { %2369 = vmatpush3.bf16.msra.mxu0 %v3137_v54 }
 0x655   : > { %2370 = vmatprep.subr.bf16.mxu0 %v2765_v44 }
 0x658   : > { %2372 = vmatpush3.bf16.msra.mxu0 %v3145_v57 }
 0x659   : > { %2373 = vmatprep.subr.bf16.mxu0 %v2765_v44 }
 0x65c   : > { %2375 = vmatpush3.bf16.msra.mxu0 %v3153_v60 }
 0x65d   : > { %2376 = vmatprep.subr.bf16.mxu0 %v2765_v44 }
 0x660   : > { %2378 = vmatpush3.bf16.msra.mxu0 %v3161_v63 }
 0x661   : > { %2379 = vmatprep.subr.bf16.mxu0 %v2765_v44 }
 0x664   : > { %2381 = vmatpush3.bf16.msra.mxu0 %v3169_v3 }
 0x71a   : > { %v1115_v26 = vpop.f32.mrb[4].mxu0 }
 0x71b   : > { %v1119_v27 = vadd.f32 %v1115_v26, %v1032_v25  ;;  %v2044_v28 = vpop.f32.mrb[5].mxu0 }
 0x71d   : > { %2527 = vtanh.f32 %v1119_v27 }
 0x727   : > { %v2528_v29 = vpop.eup %2527 }
 0x728   : > { %1121 = vst [vmem:[#allocation10 + $0x20] sm:$0xff] %v2528_v29  ;;  %2078 = vmatmul.mubr.f32.vlgmr.msra.gmra.mrb[4].mxu1 %v2528_v29 }
 0x729   : > { %2384 = vmatpush3.bf16.msra.mxu1 %v3112_v45  ;;  %2147 = vmatprep.mubr.msk.f32.mxu1 %vm2766_vm0, %v2767_v47 }
 0x72a   : > { %2385 = vmatprep.subr.bf16.mxu1 %v2765_v44 }
 0x72d   : > { %2387 = vmatpush3.bf16.msra.mxu1 %v3121_v48 }
 0x72e   : > { %2388 = vmatprep.subr.bf16.mxu1 %v2765_v44 }
 0x731   : > { %2390 = vmatpush3.bf16.msra.mxu1 %v3129_v51 }
 0x732   : > { %2391 = vmatprep.subr.bf16.mxu1 %v2765_v44 }
 0x735   : > { %2393 = vmatpush3.bf16.msra.mxu1 %v3137_v54 }
 0x736   : > { %2394 = vmatprep.subr.bf16.mxu1 %v2765_v44 }
 0x739   : > { %2396 = vmatpush3.bf16.msra.mxu1 %v3145_v57 }
 0x73a   : > { %2397 = vmatprep.subr.bf16.mxu1 %v2765_v44 }
 0x73d   : > { %2399 = vmatpush3.bf16.msra.mxu1 %v3153_v60 }
 0x73e   : > { %2400 = vmatprep.subr.bf16.mxu1 %v2765_v44 }
 0x741   : > { %2402 = vmatpush3.bf16.msra.mxu1 %v3161_v63 }
 0x742   : > { %2403 = vmatprep.subr.bf16.mxu1 %v2765_v44 }
 0x745   : > { %2405 = vmatpush3.bf16.msra.mxu1 %v3169_v3 }
 0x7fb   : > { %v1206_v31 = vpop.f32.mrb[4].mxu1 }
 0x7fc   : > { %v1210_v32 = vadd.f32 %v1206_v31, %v1123_v30  ;;  %v2079_v33 = vpop.f32.mrb[5].mxu1 }
 0x7fe   : > { %2529 = vtanh.f32 %v1210_v32 }
 0x808   : > { %v2530_v34 = vpop.eup %2529 }
 0x809   : > { %1212 = vst [vmem:[#allocation10 + $0x28] sm:$0xff] %v2530_v34  ;;  %2113 = vmatmul.mubr.f32.vlgmr.msra.gmra.mrb[6].mxu0 %v2530_v34 }
 0x8dc   : > { %v1297_v36 = vpop.f32.mrb[6].mxu0 }
 0x8dd   : > { %v1301_v37 = vadd.f32 %v1297_v36, %v1214_v35  ;;  %v2114_v38 = vpop.f32.mrb[7].mxu0 }
 0x8df   : > { %2531 = vtanh.f32 %v1301_v37 }
 0x8e9   : > { %v2532_v39 = vpop.eup %2531 }
 0x8ea   : > { %1303 = vst [vmem:[#allocation10 + $0x30] sm:$0xff] %v2532_v39  ;;  %2148 = vmatmul.mubr.f32.vlgmr.msra.gmra.mrb[6].mxu1 %v2532_v39 }
 0x9bd   : > { %v1388_v0 = vpop.f32.mrb[6].mxu1 }
 0x9be   : > { %v1392_v41 = vadd.f32 %v1388_v0, %v1305_v40  ;;  %v2149_v42 = vpop.f32.mrb[7].mxu1 }
 0x9c0   : > { %2533 = vtanh.f32 %v1392_v41 }
 0x9ca   : > { %v2534_v43 = vpop.eup %2533 }
 0x9cb   : > { %1394 = vst [vmem:[#allocation10 + $0x38] sm:$0xff] %v2534_v43  ;;  %1395 = vst [vmem:[%s3069_s1] sm:$0xff] %v2534_v43 }
 0x9cc   : > { %2666 = shalt.err (!%p2663_p8)
}
 0x9cd   : > { %s2667_s23 = scalar_lea.hbm %s3362_s5, 1024  ;;  %p3409_p12 = pmov %p3408_p10 }
 0x9ce   : > { %p2668_p1 = scmp.ne.s32.totalorder %s3362_s5, %s2667_s23  ;;  %p2673_p4 = scmp.lt.u32.totalorder %s2667_s23, %s3362_s5 }
 0x9d0   : > { %p2669_p0 = pnand %p2668_p1, %p3409_p12 }
 0x9d2   : > { %p2670_p9 = pneg %p2669_p0 }
 0x9d4   : > { %p2675_p13 = pnand %p2673_p4, %p2670_p9 }
 0x9d6   : > { %2678 = shalt.err (!%p2675_p13)
}
 0x9d7   : > { %s2769_s28 = smov 128   ;;  %s2770_s26 = smov 8  }
 0x9d8   : > { %p3410_p2 = pmov %p3408_p10  ;;  %s1397_s10 = scalar_lea.sflag [#allocation12], %s3043_s18 }
 0x9d9   : > { %s2679_s1 = scalar_lea.vmem %s3292_s16, 128  ;;  %p3411_p11 = scmp.ne.s32.totalorder %s3392_s13, 0 }
 0x9da   : > { %2449 = dma.vmem_to_hbm [thread:$0]  (%p3410_p2), %s1408_s15, 1024, %s3362_s5, [#allocation4], %s2769_s28, %s2769_s28, %s2770_s26  }
 0x9db   : > { %p2680_p10 = scmp.ne.s32.totalorder %s3292_s16, %s2679_s1  ;;  %s2771_s11 = smov [#allocation11]  }
 0x9dc   : > { %s2683_s8 = sshll.u32 %s2771_s11, 4  ;;  %s2684_s8 = int_to_ptr.vmem [resolvable:$false] %s2683_s8 }
 0x9dd   : > { %p2681_p6 = pnand %p2680_p10, %p3411_p11  ;;  %s2685_s29 = scalar_lea.vmem %s2684_s8, 256 }
 0x9de   : > { %p2686_p7 = scmp.lt.s32.totalorder %s3292_s16, %s2684_s8  ;;  %p2687_p5 = scmp.lt.s32.totalorder %s2685_s29, %s2679_s1 }
 0x9df   : > { %p2682_p3 = pneg %p2681_p6 }
 0x9e0   : > { %p2688_p8 = por %p2687_p5, %p2686_p7 }
 0x9e2   : > { %p2689_p1 = pnand %p2688_p8, %p2682_p3 }
 0x9e4   : > { %2692 = shalt.err (!%p2689_p1)
}
 0x9e5   : > { %s2693_s18 = scalar_lea.hbm %s3290_s2, 128  ;;  %s2697_s21 = scalar_lea.hbm %s3363_s6, 256 }
 0x9e6   : > { %p2694_p12 = scmp.ne.s32.totalorder %s3290_s2, %s2693_s18  ;;  %p2698_p4 = scmp.lt.u32.totalorder %s3290_s2, %s3363_s6 }
 0x9e7   : > { %p2699_p13 = scmp.lt.u32.totalorder %s2697_s21, %s2693_s18  ;;  %p2701_p10 = scmp.lt.u32.totalorder %s2693_s18, %s3290_s2 }
 0x9e8   : > { %p2695_p0 = pnand %p2694_p12, %p3411_p11 }
 0x9e9   : > { %p2700_p2 = por %p2699_p13, %p2698_p4 }
 0x9ea   : > { %p2696_p9 = pneg %p2695_p0 }
 0x9eb   : > { %p2702_p6 = por %p2701_p10, %p2700_p2 }
 0x9ed   : > { %p2703_p3 = pnand %p2702_p6, %p2696_p9 }
 0x9ef   : > { %2706 = shalt.err (!%p2703_p3)
}
 0x9f0   : > { %2450 = dma.vmem_to_hbm [thread:$0]  (%p3411_p11), %s3292_s16, 128, %s3290_s2, %s1397_s10  }
 0x9f1   : > { %p3412_p7 = scmp.eq.s32.totalorder %s2897_s19, 1 }
 0x9f3   : > { %2736 = dma.done.wait (%p3412_p7), [#allocation4], 1024   ;;  %p3413_p5 = pmov %p3412_p7 }
 0x9f5   : > { %2738 = vsyncadd (%p3413_p5), [#allocation4], 4294966272 }
 0x9f6 PF: > { %s3414_s23 = sld [smem:[#allocation18_spill]]  ;;  %s3415_s25 = sld [smem:[#allocation22_spill]] }
 0x9f7   : > { %p3417_p1 = scmp.ge.s32.totalorder %s2757_s24, 2 }
 0x9fc   : > { %s1439_s27 = sand.u32 1, %s3414_s23   ;;  %p3416_p8 = scmp.ne.s32.totalorder %s3415_s25, 0 }
 0x9fd   : > { %s1440_s7 = scalar_lea.sflag [#allocation12], %s1439_s27 }
 0x9fe   : > { %p2469_p12 = pnand %p3417_p1, %p3416_p8 }
 0xa00   : > { %2740 = dma.done.wait (!%p2469_p12), %s1440_s7, 128  }
 0xa01   : > { %2742 = vsyncadd (!%p2469_p12), %s1440_s7, 4294967168  ;;  %s3418_s24 = sld [smem:[#allocation20_spill]]  ;;  %s3419_s13 = sld [smem:[#allocation19_spill]] }
 0xa02   : > { %s3420_s23 = sld [smem:[#allocation21_spill]]  ;;  %s3421_s21 = smov %s2749_s22 }
 0xa07   : > { %p25_p11 = scmp.ge.s32.totalorder %s3418_s24, 4   ;;  %s3422_s22 = smov %s3419_s13 }
 0xa09   :  { %27 = sbr.rel (!%p25_p11) target bundleno = 12 (0xc), region = 141 }
 0xa10   :  { %1445 = vsyncpa [#allocation3], 1 }
 0xa11   :  { %1447 = vsyncpa [#allocation3 + $0x1], 1 }
 0xa12   :  { %1448 = vsyncpa [#allocation6], 1 }
 0xa13   :  { %1450 = vsyncpa [#allocation6 + $0x1], 1 }
 0xa14   :  { %1451 = vsyncpa [#allocation9], 1 }
 0xa15   :  { %1453 = vsyncpa [#allocation9 + $0x1], 1 }
 0xa16   :  { %1454 = vsyncpa [#allocation4], 1 }
 0xa17   :  { %1456 = vsyncpa [#allocation4 + $0x1], 1 }
 0xa18   :  { %1457 = vsyncpa [#allocation12], 1 }
 0xa19   :  { %1459 = vsyncpa [#allocation12 + $0x1], 1 }

</bundles_post_ra>
